<compile_context>
chip_gen: v7x
topology: tpu7x:2x2x1
jax: 0.10.0
libtpu: 0.0.40
codegen_flags: <defaults>
</compile_context>

<pallas_src>
import functools
import math

import numpy as np
import jax
import jax.numpy as jnp
from jax.experimental import pallas as pl
from jax.experimental.pallas import tpu as pltpu


# ----------------------------------------------------------------------------
# Host-side preprocessing (data-dependent variable-length nonzero scan; glue,
# mirrors TransformerModel.get_non_zero_indexes_n_weights exactly).
# ----------------------------------------------------------------------------
def get_non_zero_indexes_n_weights(src_np: np.ndarray, d_model: int):
    batch_size = src_np.shape[0]
    indexes = np.zeros((batch_size, d_model), dtype=np.int32)
    weights = np.zeros((batch_size, d_model), dtype=np.float32)
    for i in range(batch_size):
        non_zero = np.nonzero(src_np[i])[0]
        indexes[i, : len(non_zero)] = non_zero
        indexes[i, len(non_zero)] = 2001
        us = np.log(src_np[i, non_zero])
        mean = us.mean()
        weights[i, : len(non_zero)] = (us - mean) / ((1.0 - mean) * 2.0) + 1.0
        weights[i, len(non_zero)] = 1.0
    return indexes, weights[..., None]  # (B, S), (B, S, 1)


@functools.lru_cache(maxsize=None)
def positional_encoding(seq_len: int, d_model: int):
    # Standard sinusoidal PE (PyTorch transformer tutorial). Cached: built and
    # uploaded once per (S, D).
    # TODO(synk): PositionalEncoding class is not defined in the reference
    # snippet; standard sinusoidal encoding + dropout=identity is assumed.
    position = np.arange(seq_len, dtype=np.float32)[:, None]
    div_term = np.exp(
        np.arange(0, d_model, 2, dtype=np.float32) * (-math.log(10000.0) / d_model)
    )
    pe = np.zeros((seq_len, d_model), dtype=np.float32)
    pe[:, 0::2] = np.sin(position * div_term)
    pe[:, 1::2] = np.cos(position * div_term)
    return jnp.asarray(pe)  # (S, D)


@functools.lru_cache(maxsize=None)
def _vmem_limit_bytes():
    # 3/4 of physical VMEM (v5e/v6e: 128 MiB -> 96 MiB; v7x: 64 MiB -> 48 MiB).
    try:
        cap = pltpu.get_tpu_info().vmem_capacity_bytes
    except Exception:
        cap = 64 * 1024 * 1024
    return int(min(96 * 1024 * 1024, cap * 3 // 4))


# ----------------------------------------------------------------------------
# Fused Pallas kernel: grid = (batch_blocks, nlayers)
#   l == 0          : copy pre-composed (embed*bagweight*sqrt(D) + PE) -> VMEM
#   every l         : one post-norm TransformerEncoderLayer (MHA + FFN)
#   l == nlayers-1  : mean-pool over S + final linear -> output block
# ----------------------------------------------------------------------------
def fused_transformer_kernel(
    x0_ref,
    wqkv_ref, bqkv_ref, wo_ref, bo_ref,
    g1_ref, be1_ref, w1_ref, b1_ref, w2_ref, b2_ref, g2_ref, be2_ref,
    lin_w_ref, lin_b_ref,
    o_ref,
    x_scr,
    *, nhead, batch, seq, d_model,
):
    l = pl.program_id(1)
    n_layers = pl.num_programs(1)
    B, S, D, H = batch, seq, d_model, nhead
    dh = D // H
    M = B * S
    attn_scale = 1.0 / math.sqrt(float(dh))

    # ---- prologue: load the pre-composed embed+PE activation ---------------
    @pl.when(l == 0)
    def _():
        x_scr[...] = x0_ref[...].reshape(M, D)

    x = x_scr[...]                      # (M, D) f32, VMEM-resident across layers
    x_bf = x.astype(jnp.bfloat16)

    # ---- fused QKV projection: one MXU matmul, bf16 operands / f32 acc ------
    qkv = jnp.dot(x_bf, wqkv_ref[0], preferred_element_type=jnp.float32) + bqkv_ref[0]
    qkv = qkv.reshape(B, S, 3 * D)

    def split_heads(col0):
        # TODO(synk): for production dh >= 128 replace the per-head lane slices
        # + stack with a single pltpu.einshape relayout (dh=8 here keeps this
        # path, which is known to lower cleanly).
        hs = [qkv[:, :, col0 + h * dh: col0 + (h + 1) * dh] for h in range(H)]
        return jnp.stack(hs, axis=1).reshape(B * H, S, dh)

    q = (split_heads(0) * attn_scale).astype(jnp.bfloat16)   # fold 1/sqrt(dh) into q
    k = split_heads(D).astype(jnp.bfloat16)
    v = split_heads(2 * D).astype(jnp.bfloat16)

    # ---- attention batched over the B*H axis --------------------------------
    scores = jnp.einsum("bqd,bkd->bqk", q, k, preferred_element_type=jnp.float32)
    scores = scores - jnp.max(scores, axis=-1, keepdims=True)
    p = jnp.exp(scores)
    p = p * pl.reciprocal(jnp.sum(p, axis=-1, keepdims=True), approx=False)
    ctx = jnp.einsum("bqk,bkd->bqd", p.astype(jnp.bfloat16), v,
                     preferred_element_type=jnp.float32)
    ctx = ctx.reshape(B, H, S, dh)
    ctx = jnp.concatenate([ctx[:, h] for h in range(H)], axis=-1)  # (B, S, D)
    ctx = ctx.reshape(M, D)

    attn = (jnp.dot(ctx.astype(jnp.bfloat16), wo_ref[0],
                    preferred_element_type=jnp.float32) + bo_ref[0])

    def layer_norm(y, g, b):
        mu = jnp.mean(y, axis=-1, keepdims=True)
        var = jnp.mean((y - mu) ** 2, axis=-1, keepdims=True)
        return (y - mu) * jax.lax.rsqrt(var + 1e-5) * g + b

    h1 = layer_norm(x + attn, g1_ref[0], be1_ref[0])

    # ---- feed-forward (flattened M = B*S), bf16 operands / f32 acc ----------
    ff = (jnp.dot(h1.astype(jnp.bfloat16), w1_ref[0],
                  preferred_element_type=jnp.float32) + b1_ref[0])
    ff = jnp.maximum(ff, 0.0)
    ff = (jnp.dot(ff.astype(jnp.bfloat16), w2_ref[0],
                  preferred_element_type=jnp.float32) + b2_ref[0])

    x_new = layer_norm(h1 + ff, g2_ref[0], be2_ref[0])
    x_scr[...] = x_new

    # ---- epilogue: mean pool over S + final linear ---------------------------
    @pl.when(l == n_layers - 1)
    def _():
        pooled = jnp.sum(x_new.reshape(B, S, D), axis=1) * (1.0 / float(S))
        out = (jnp.dot(pooled, lin_w_ref[...], preferred_element_type=jnp.float32)
               + lin_b_ref[...])
        o_ref[...] = out.reshape(B, 1, -1)


# ----------------------------------------------------------------------------
# Parameters (deterministic synthetic init; per-layer weights stacked on a
# leading layer dim so a single pallas_call can index them by grid position).
# Big layer weights are stored bf16 (halves per-layer HBM weight stream; the
# kernel accumulates in f32).  QKV columns packed as [q | k | v].
# ----------------------------------------------------------------------------
def init_params(key, ntoken, d_model, nhead, d_hid, nlayers, d_output):
    del nhead  # head split happens inside the kernel
    keys = jax.random.split(key, 2 + nlayers)

    def u(k, shape, scale):
        return jax.random.uniform(k, shape, jnp.float32, -scale, scale)

    s_in = 1.0 / math.sqrt(d_model)
    s_hid = 1.0 / math.sqrt(d_hid)

    w_qkv, wo, w1, w2 = [], [], [], []
    for l in range(nlayers):
        lk = jax.random.split(keys[2 + l], 6)
        w_qkv.append(jnp.concatenate(
            [u(lk[0], (d_model, d_model), s_in),
             u(lk[1], (d_model, d_model), s_in),
             u(lk[2], (d_model, d_model), s_in)], axis=1))
        wo.append(u(lk[3], (d_model, d_model), s_in))
        w1.append(u(lk[4], (d_model, d_hid), s_in))
        w2.append(u(lk[5], (d_hid, d_model), s_hid))

    L = nlayers
    bf16 = jnp.bfloat16
    return {
        "embedding": u(keys[0], (ntoken, d_model), 0.1),        # uniform(-0.1, 0.1)
        "lin_w": u(keys[1], (d_model, d_output), 0.1),
        "lin_b": jnp.zeros((1, d_output), jnp.float32),
        "w_qkv": jnp.stack(w_qkv).astype(bf16),                 # (L, D, 3D) bf16
        "b_qkv": jnp.zeros((L, 1, 3 * d_model), jnp.float32),
        "wo": jnp.stack(wo).astype(bf16),
        "bo": jnp.zeros((L, 1, d_model), jnp.float32),
        "g1": jnp.ones((L, 1, d_model), jnp.float32),
        "be1": jnp.zeros((L, 1, d_model), jnp.float32),
        "w1": jnp.stack(w1).astype(bf16),
        "b1": jnp.zeros((L, 1, d_hid), jnp.float32),
        "w2": jnp.stack(w2).astype(bf16),
        "b2": jnp.zeros((L, 1, d_model), jnp.float32),
        "g2": jnp.ones((L, 1, d_model), jnp.float32),
        "be2": jnp.zeros((L, 1, d_model), jnp.float32),
    }


# ----------------------------------------------------------------------------
# Device forward: one fused pallas_call (embed+PE -> nlayers encoder -> pool+lin)
# ----------------------------------------------------------------------------
@functools.partial(jax.jit, static_argnames=("nhead", "num_batch_blocks"))
def _device_forward(params, idx, wgt, pe, *, nhead, num_batch_blocks=1):
    D = params["embedding"].shape[1]
    # Embedding gather + bag-weight scale + PE add are cheap elementwise glue
    # fused by XLA around the kernel; this keeps the padded (B,S,1) weights and
    # (S,D) PE out of the kernel's double-buffered VMEM pipeline.
    emb = jnp.take(params["embedding"], idx, axis=0)            # (B, S, D)
    x0 = (wgt * emb * math.sqrt(float(D)) + pe[None]).astype(jnp.float32)
    B, S, _ = x0.shape
    L = params["w_qkv"].shape[0]
    d_hid = params["w1"].shape[2]
    d_out = params["lin_w"].shape[1]
    H = nhead
    dh = D // H

    # num_batch_blocks = 1 -> bb = B (weights streamed exactly L times; best on
    # single-TC v5e/v6e).  num_batch_blocks = 2 on v7x keeps two "parallel"
    # blocks, one per TensorCore.
    nb = num_batch_blocks
    if nb < 1 or B % nb != 0:
        nb = 1
    bb = B // nb

    kernel = functools.partial(
        fused_transformer_kernel, nhead=nhead, batch=bb, seq=S, d_model=D)

    def layer_w(shape):  # layer-stacked weight: prefetched per grid step l
        return pl.BlockSpec((1,) + shape, lambda b, l: (l, 0, 0))

    grid_spec = pltpu.PrefetchScalarGridSpec(
        num_scalar_prefetch=0,
        grid=(nb, L),
        in_specs=[
            pl.BlockSpec((bb, S, D), lambda b, l: (b, 0, 0)),   # pre-composed x0
            layer_w((D, 3 * D)), layer_w((1, 3 * D)),           # w_qkv, b_qkv
            layer_w((D, D)), layer_w((1, D)),                   # wo, bo
            layer_w((1, D)), layer_w((1, D)),                   # ln1 gamma, beta
            layer_w((D, d_hid)), layer_w((1, d_hid)),           # w1, b1
            layer_w((d_hid, D)), layer_w((1, D)),               # w2, b2
            layer_w((1, D)), layer_w((1, D)),                   # ln2 gamma, beta
            pl.BlockSpec((D, d_out), lambda b, l: (0, 0)),      # final linear W
            pl.BlockSpec((1, d_out), lambda b, l: (0, 0)),      # final linear b
        ],
        out_specs=pl.BlockSpec((bb, 1, d_out), lambda b, l: (b, 0, 0)),
        scratch_shapes=[pltpu.VMEM((bb * S, D), jnp.float32)],  # carried activation
    )

    # Advisory cost estimate (projection/FFN + attention flops, exp count,
    # bf16 weight stream repeated nb times + activations).
    M = B * S
    mm_flops = 2 * M * D * (4 * D + 2 * d_hid)
    attn_flops = 4 * B * H * S * S * dh
    flops = L * (mm_flops + attn_flops) + 2 * B * D * d_out
    layer_w_bytes = 2 * (4 * D * D + 2 * D * d_hid)             # bf16 weights
    bytes_accessed = nb * L * layer_w_bytes + 4 * M * D + 4 * B * d_out
    cost = pl.CostEstimate(flops=int(flops),
                           transcendentals=int(L * B * H * S * S),
                           bytes_accessed=int(bytes_accessed))

    out = pl.pallas_call(
        kernel,
        out_shape=jax.ShapeDtypeStruct((B, 1, d_out), jnp.float32),
        grid_spec=grid_spec,
        compiler_params=pltpu.CompilerParams(
            dimension_semantics=("parallel", "arbitrary"),
            vmem_limit_bytes=_vmem_limit_bytes(),
        ),
        cost_estimate=cost,
    )(x0,
      params["w_qkv"], params["b_qkv"], params["wo"], params["bo"],
      params["g1"], params["be1"], params["w1"], params["b1"],
      params["w2"], params["b2"], params["g2"], params["be2"],
      params["lin_w"], params["lin_b"])
    return out.reshape(B, d_out)


def transformer_forward(params, src_np, *, d_model, nhead, num_batch_blocks=1):
    indexes, weights = get_non_zero_indexes_n_weights(src_np, d_model)
    idx = jnp.asarray(indexes)                      # (B, S) int32, S == d_model
    wgt = jnp.asarray(weights)                      # (B, S, 1) float32
    pe = positional_encoding(d_model, d_model)      # cached (S, D); S == d_model
    return _device_forward(params, idx, wgt, pe, nhead=nhead,
                           num_batch_blocks=num_batch_blocks)


# ----------------------------------------------------------------------------
if __name__ == "__main__":
    # Small config. ntoken must exceed 2001 because the model hard-codes the
    # special token index 2001.
    NTOKEN, D_MODEL, NHEAD, D_HID, NLAYERS, D_OUTPUT = 2002, 32, 4, 64, 2, 8
    BATCH = 2

    key = jax.random.PRNGKey(0)
    k_mask, k_cnt, k_params = jax.random.split(key, 3)

    # Sparse count vector input (B, ntoken): ~8 nonzero positive integer counts
    # per row (must stay below d_model - 1 nonzeros, as the model assumes).
    mask = jax.random.uniform(k_mask, (BATCH, NTOKEN)) < (8.0 / NTOKEN)
    counts = jax.random.randint(k_cnt, (BATCH, NTOKEN), 1, 10)
    src = (mask * counts).astype(jnp.float32)
    src = src.at[:, 1].set(2.0).at[:, 5].set(4.0)  # guarantee >= 2 nonzeros/row
    src_np = np.asarray(src)

    params = init_params(k_params, NTOKEN, D_MODEL, NHEAD, D_HID, NLAYERS, D_OUTPUT)

    # Default num_batch_blocks=1 (bb = B): best for single-TC v5e/v6e.
    # On v7x pass num_batch_blocks=2 to shard the parallel batch axis across
    # the two TensorCores.
    out = transformer_forward(params, src_np, d_model=D_MODEL, nhead=NHEAD)
    out = jax.block_until_ready(out)
    assert out.shape == (BATCH, D_OUTPUT) and out.dtype == jnp.float32
    assert bool(jnp.all(jnp.isfinite(out)))
    print("KERNEL_OK")
</pallas_src>

<mosaic_0001>
module attributes {stable_mosaic.version = 11 : i64} {
  func.func @fused_transformer_kernel(%arg0: i32, %arg1: i32, %arg2: memref<2x32x32xf32, #tpu.memory_space<vmem>>, %arg3: memref<1x32x96xbf16, #tpu.memory_space<vmem>>, %arg4: memref<1x1x96xf32, #tpu.memory_space<vmem>>, %arg5: memref<1x32x32xbf16, #tpu.memory_space<vmem>>, %arg6: memref<1x1x32xf32, #tpu.memory_space<vmem>>, %arg7: memref<1x1x32xf32, #tpu.memory_space<vmem>>, %arg8: memref<1x1x32xf32, #tpu.memory_space<vmem>>, %arg9: memref<1x32x64xbf16, #tpu.memory_space<vmem>>, %arg10: memref<1x1x64xf32, #tpu.memory_space<vmem>>, %arg11: memref<1x64x32xbf16, #tpu.memory_space<vmem>>, %arg12: memref<1x1x32xf32, #tpu.memory_space<vmem>>, %arg13: memref<1x1x32xf32, #tpu.memory_space<vmem>>, %arg14: memref<1x1x32xf32, #tpu.memory_space<vmem>>, %arg15: memref<32x8xf32, #tpu.memory_space<vmem>>, %arg16: memref<1x8xf32, #tpu.memory_space<vmem>>, %arg17: memref<2x1x8xf32, #tpu.memory_space<vmem>>, %arg18: memref<64x32xf32, #tpu.memory_space<vmem>>) attributes {dimension_semantics = [#tpu.dimension_semantics<parallel>, #tpu.dimension_semantics<arbitrary>], iteration_bounds = array<i64: 1, 2>, scalar_prefetch = 0 : i64, scratch_operands = 1 : i64, tpu.core_type = #tpu.core_type<tc>, window_params = [{transform_indices = @transform_0, window_bounds = array<i64: 2, 32, 32>}, {transform_indices = @transform_1, window_bounds = array<i64: 1, 32, 96>}, {transform_indices = @transform_2, window_bounds = array<i64: 1, 1, 96>}, {transform_indices = @transform_3, window_bounds = array<i64: 1, 32, 32>}, {transform_indices = @transform_4, window_bounds = array<i64: 1, 1, 32>}, {transform_indices = @transform_5, window_bounds = array<i64: 1, 1, 32>}, {transform_indices = @transform_6, window_bounds = array<i64: 1, 1, 32>}, {transform_indices = @transform_7, window_bounds = array<i64: 1, 32, 64>}, {transform_indices = @transform_8, window_bounds = array<i64: 1, 1, 64>}, {transform_indices = @transform_9, window_bounds = array<i64: 1, 64, 32>}, {transform_indices = @transform_10, window_bounds = array<i64: 1, 1, 32>}, {transform_indices = @transform_11, window_bounds = array<i64: 1, 1, 32>}, {transform_indices = @transform_12, window_bounds = array<i64: 1, 1, 32>}, {pipeline_mode = #tpu.pipeline_mode<synchronous>, transform_indices = @transform_13, window_bounds = array<i64: 32, 8>}, {pipeline_mode = #tpu.pipeline_mode<synchronous>, transform_indices = @transform_14, window_bounds = array<i64: 1, 8>}, {transform_indices = @transform_15, window_bounds = array<i64: 2, 1, 8>}]} {
    %c0_i32 = arith.constant 0 : i32
    %0 = arith.cmpi eq, %arg1, %c0_i32 : i32
    %1 = arith.extui %0 : i1 to i32
    %c0_i32_0 = arith.constant 0 : i32
    %2 = arith.cmpi ne, %1, %c0_i32_0 : i32
    scf.if %2 {
      %c0_60 = arith.constant 0 : index
      %c0_61 = arith.constant 0 : index
      %c0_62 = arith.constant 0 : index
      %156 = vector.load %arg2[%c0_60, %c0_61, %c0_62] : memref<2x32x32xf32, #tpu.memory_space<vmem>>, vector<2x32x32xf32>
      %157 = vector.shape_cast %156 : vector<2x32x32xf32> to vector<64x32xf32>
      %c0_63 = arith.constant 0 : index
      %c0_64 = arith.constant 0 : index
      %158 = vector.load %arg18[%c0_63, %c0_64] : memref<64x32xf32, #tpu.memory_space<vmem>>, vector<64x32xf32>
      tpu.vector_store %arg18[%c0_63, %c0_64], %157 {strides = array<i32>} : memref<64x32xf32, #tpu.memory_space<vmem>>, vector<64x32xf32>,
    } else {
    }
    %c0 = arith.constant 0 : index
    %c0_1 = arith.constant 0 : index
    %3 = vector.load %arg18[%c0, %c0_1] : memref<64x32xf32, #tpu.memory_space<vmem>>, vector<64x32xf32>
    %4 = arith.truncf %3 : vector<64x32xf32> to vector<64x32xbf16>
    %c0_2 = arith.constant 0 : index
    %c0_3 = arith.constant 0 : index
    %c0_4 = arith.constant 0 : index
    %5 = vector.load %arg3[%c0_2, %c0_3, %c0_4] : memref<1x32x96xbf16, #tpu.memory_space<vmem>>, vector<1x32x96xbf16>
    %6 = vector.shape_cast %5 : vector<1x32x96xbf16> to vector<32x96xbf16>
    %cst = arith.constant dense<0.000000e+00> : vector<64x96xf32>
    %7 = tpu.matmul %4, %6, %cst {dimension_numbers = #tpu.dot_dimension_numbers<[1], [0], [0], [1], [0, 0, 1, 1], [], []>} : vector<64x32xbf16>, vector<32x96xbf16>, vector<64x96xf32> -> vector<64x96xf32>
    %c0_5 = arith.constant 0 : index
    %c0_6 = arith.constant 0 : index
    %c0_7 = arith.constant 0 : index
    %8 = vector.load %arg4[%c0_5, %c0_6, %c0_7] : memref<1x1x96xf32, #tpu.memory_space<vmem>>, vector<1x1x96xf32>
    %9 = vector.shape_cast %8 : vector<1x1x96xf32> to vector<1x96xf32>
    %10 = vector.broadcast %9 : vector<1x96xf32> to vector<64x96xf32>
    %11 = arith.addf %7, %10 : vector<64x96xf32>
    %12 = vector.shape_cast %11 : vector<64x96xf32> to vector<2x32x96xf32>
    %13 = vector.extract_strided_slice %12 {offsets = [0, 0, 0], sizes = [2, 32, 8], strides = [1, 1, 1]} : vector<2x32x96xf32> to vector<2x32x8xf32>
    %14 = vector.extract_strided_slice %12 {offsets = [0, 0, 8], sizes = [2, 32, 8], strides = [1, 1, 1]} : vector<2x32x96xf32> to vector<2x32x8xf32>
    %15 = vector.extract_strided_slice %12 {offsets = [0, 0, 16], sizes = [2, 32, 8], strides = [1, 1, 1]} : vector<2x32x96xf32> to vector<2x32x8xf32>
    %16 = vector.extract_strided_slice %12 {offsets = [0, 0, 24], sizes = [2, 32, 8], strides = [1, 1, 1]} : vector<2x32x96xf32> to vector<2x32x8xf32>
    %17 = vector.shape_cast %13 : vector<2x32x8xf32> to vector<2x1x32x8xf32>
    %18 = vector.shape_cast %14 : vector<2x32x8xf32> to vector<2x1x32x8xf32>
    %19 = vector.shape_cast %15 : vector<2x32x8xf32> to vector<2x1x32x8xf32>
    %20 = vector.shape_cast %16 : vector<2x32x8xf32> to vector<2x1x32x8xf32>
    %21 = tpu.concatenate %17, %18, %19, %20 in 1 : vector<2x1x32x8xf32>, vector<2x1x32x8xf32>, vector<2x1x32x8xf32>, vector<2x1x32x8xf32> -> vector<2x4x32x8xf32>
    %22 = vector.shape_cast %21 : vector<2x4x32x8xf32> to vector<8x32x8xf32>
    %cst_8 = arith.constant 0.353553385 : f32
    %23 = vector.broadcast %cst_8 : f32 to vector<8x32x8xf32>
    %24 = arith.mulf %22, %23 : vector<8x32x8xf32>
    %25 = arith.truncf %24 : vector<8x32x8xf32> to vector<8x32x8xbf16>
    %26 = vector.extract_strided_slice %12 {offsets = [0, 0, 32], sizes = [2, 32, 8], strides = [1, 1, 1]} : vector<2x32x96xf32> to vector<2x32x8xf32>
    %27 = vector.extract_strided_slice %12 {offsets = [0, 0, 40], sizes = [2, 32, 8], strides = [1, 1, 1]} : vector<2x32x96xf32> to vector<2x32x8xf32>
    %28 = vector.extract_strided_slice %12 {offsets = [0, 0, 48], sizes = [2, 32, 8], strides = [1, 1, 1]} : vector<2x32x96xf32> to vector<2x32x8xf32>
    %29 = vector.extract_strided_slice %12 {offsets = [0, 0, 56], sizes = [2, 32, 8], strides = [1, 1, 1]} : vector<2x32x96xf32> to vector<2x32x8xf32>
    %30 = vector.shape_cast %26 : vector<2x32x8xf32> to vector<2x1x32x8xf32>
    %31 = vector.shape_cast %27 : vector<2x32x8xf32> to vector<2x1x32x8xf32>
    %32 = vector.shape_cast %28 : vector<2x32x8xf32> to vector<2x1x32x8xf32>
    %33 = vector.shape_cast %29 : vector<2x32x8xf32> to vector<2x1x32x8xf32>
    %34 = tpu.concatenate %30, %31, %32, %33 in 1 : vector<2x1x32x8xf32>, vector<2x1x32x8xf32>, vector<2x1x32x8xf32>, vector<2x1x32x8xf32> -> vector<2x4x32x8xf32>
    %35 = vector.shape_cast %34 : vector<2x4x32x8xf32> to vector<8x32x8xf32>
    %36 = arith.truncf %35 : vector<8x32x8xf32> to vector<8x32x8xbf16>
    %37 = vector.extract_strided_slice %12 {offsets = [0, 0, 64], sizes = [2, 32, 8], strides = [1, 1, 1]} : vector<2x32x96xf32> to vector<2x32x8xf32>
    %38 = vector.extract_strided_slice %12 {offsets = [0, 0, 72], sizes = [2, 32, 8], strides = [1, 1, 1]} : vector<2x32x96xf32> to vector<2x32x8xf32>
    %39 = vector.extract_strided_slice %12 {offsets = [0, 0, 80], sizes = [2, 32, 8], strides = [1, 1, 1]} : vector<2x32x96xf32> to vector<2x32x8xf32>
    %40 = vector.extract_strided_slice %12 {offsets = [0, 0, 88], sizes = [2, 32, 8], strides = [1, 1, 1]} : vector<2x32x96xf32> to vector<2x32x8xf32>
    %41 = vector.shape_cast %37 : vector<2x32x8xf32> to vector<2x1x32x8xf32>
    %42 = vector.shape_cast %38 : vector<2x32x8xf32> to vector<2x1x32x8xf32>
    %43 = vector.shape_cast %39 : vector<2x32x8xf32> to vector<2x1x32x8xf32>
    %44 = vector.shape_cast %40 : vector<2x32x8xf32> to vector<2x1x32x8xf32>
    %45 = tpu.concatenate %41, %42, %43, %44 in 1 : vector<2x1x32x8xf32>, vector<2x1x32x8xf32>, vector<2x1x32x8xf32>, vector<2x1x32x8xf32> -> vector<2x4x32x8xf32>
    %46 = vector.shape_cast %45 : vector<2x4x32x8xf32> to vector<8x32x8xf32>
    %47 = arith.truncf %46 : vector<8x32x8xf32> to vector<8x32x8xbf16>
    "tpu.trace_start"() <{level = 10 : i32, message = "bqd,bkd->bqk"}> : () -> ()
    %cst_9 = arith.constant dense<0.000000e+00> : vector<8x32x32xf32>
    %48 = tpu.matmul %25, %36, %cst_9 {dimension_numbers = #tpu.dot_dimension_numbers<[2], [2], [1], [1], [0, 0, 0, 1, 1, 1], [0], [0]>} : vector<8x32x8xbf16>, vector<8x32x8xbf16>, vector<8x32x32xf32> -> vector<8x32x32xf32>
    "tpu.trace_stop"() : () -> ()
    %cst_10 = arith.constant dense<0xFF800000> : vector<8x32xf32>
    %49 = vector.multi_reduction <maximumf>, %48, %cst_10 [2] : vector<8x32x32xf32> to vector<8x32xf32>
    %50 = vector.shape_cast %49 : vector<8x32xf32> to vector<8x32x1xf32>
    %51 = vector.broadcast %50 : vector<8x32x1xf32> to vector<8x32x32xf32>
    %52 = arith.subf %48, %51 : vector<8x32x32xf32>
    %53 = math.exp %52 : vector<8x32x32xf32>
    %cst_11 = arith.constant dense<0.000000e+00> : vector<8x32xf32>
    %54 = vector.multi_reduction <add>, %53, %cst_11 [2] : vector<8x32x32xf32> to vector<8x32xf32>
    %55 = vector.shape_cast %54 : vector<8x32xf32> to vector<8x32x1xf32>
    %56 = tpu.reciprocal %55 : vector<8x32x1xf32> -> vector<8x32x1xf32>
    %57 = vector.broadcast %56 : vector<8x32x1xf32> to vector<8x32x32xf32>
    %58 = arith.mulf %53, %57 : vector<8x32x32xf32>
    %59 = arith.truncf %58 : vector<8x32x32xf32> to vector<8x32x32xbf16>
    "tpu.trace_start"() <{level = 10 : i32, message = "bqk,bkd->bqd"}> : () -> ()
    %cst_12 = arith.constant dense<0.000000e+00> : vector<8x32x8xf32>
    %60 = tpu.matmul %59, %47, %cst_12 {dimension_numbers = #tpu.dot_dimension_numbers<[2], [1], [1], [2], [0, 0, 0, 1, 1, 2], [0], [0]>} : vector<8x32x32xbf16>, vector<8x32x8xbf16>, vector<8x32x8xf32> -> vector<8x32x8xf32>
    "tpu.trace_stop"() : () -> ()
    %61 = vector.shape_cast %60 : vector<8x32x8xf32> to vector<2x4x32x8xf32>
    %62 = vector.extract_strided_slice %61 {offsets = [0, 0, 0, 0], sizes = [2, 1, 32, 8], strides = [1, 1, 1, 1]} : vector<2x4x32x8xf32> to vector<2x1x32x8xf32>
    %63 = vector.shape_cast %62 : vector<2x1x32x8xf32> to vector<2x32x8xf32>
    %64 = vector.extract_strided_slice %61 {offsets = [0, 1, 0, 0], sizes = [2, 1, 32, 8], strides = [1, 1, 1, 1]} : vector<2x4x32x8xf32> to vector<2x1x32x8xf32>
    %65 = vector.shape_cast %64 : vector<2x1x32x8xf32> to vector<2x32x8xf32>
    %66 = vector.extract_strided_slice %61 {offsets = [0, 2, 0, 0], sizes = [2, 1, 32, 8], strides = [1, 1, 1, 1]} : vector<2x4x32x8xf32> to vector<2x1x32x8xf32>
    %67 = vector.shape_cast %66 : vector<2x1x32x8xf32> to vector<2x32x8xf32>
    %68 = vector.extract_strided_slice %61 {offsets = [0, 3, 0, 0], sizes = [2, 1, 32, 8], strides = [1, 1, 1, 1]} : vector<2x4x32x8xf32> to vector<2x1x32x8xf32>
    %69 = vector.shape_cast %68 : vector<2x1x32x8xf32> to vector<2x32x8xf32>
    %70 = tpu.concatenate %63, %65, %67, %69 in 2 : vector<2x32x8xf32>, vector<2x32x8xf32>, vector<2x32x8xf32>, vector<2x32x8xf32> -> vector<2x32x32xf32>
    %71 = vector.shape_cast %70 : vector<2x32x32xf32> to vector<64x32xf32>
    %72 = arith.truncf %71 : vector<64x32xf32> to vector<64x32xbf16>
    %c0_13 = arith.constant 0 : index
    %c0_14 = arith.constant 0 : index
    %c0_15 = arith.constant 0 : index
    %73 = vector.load %arg5[%c0_13, %c0_14, %c0_15] : memref<1x32x32xbf16, #tpu.memory_space<vmem>>, vector<1x32x32xbf16>
    %74 = vector.shape_cast %73 : vector<1x32x32xbf16> to vector<32x32xbf16>
    %cst_16 = arith.constant dense<0.000000e+00> : vector<64x32xf32>
    %75 = tpu.matmul %72, %74, %cst_16 {dimension_numbers = #tpu.dot_dimension_numbers<[1], [0], [0], [1], [0, 0, 1, 1], [], []>} : vector<64x32xbf16>, vector<32x32xbf16>, vector<64x32xf32> -> vector<64x32xf32>
    %c0_17 = arith.constant 0 : index
    %c0_18 = arith.constant 0 : index
    %c0_19 = arith.constant 0 : index
    %76 = vector.load %arg6[%c0_17, %c0_18, %c0_19] : memref<1x1x32xf32, #tpu.memory_space<vmem>>, vector<1x1x32xf32>
    %77 = vector.shape_cast %76 : vector<1x1x32xf32> to vector<1x32xf32>
    %78 = vector.broadcast %77 : vector<1x32xf32> to vector<64x32xf32>
    %79 = arith.addf %75, %78 : vector<64x32xf32>
    %80 = arith.addf %3, %79 : vector<64x32xf32>
    %c0_20 = arith.constant 0 : index
    %c0_21 = arith.constant 0 : index
    %c0_22 = arith.constant 0 : index
    %81 = vector.load %arg7[%c0_20, %c0_21, %c0_22] : memref<1x1x32xf32, #tpu.memory_space<vmem>>, vector<1x1x32xf32>
    %82 = vector.shape_cast %81 : vector<1x1x32xf32> to vector<1x32xf32>
    %c0_23 = arith.constant 0 : index
    %c0_24 = arith.constant 0 : index
    %c0_25 = arith.constant 0 : index
    %83 = vector.load %arg8[%c0_23, %c0_24, %c0_25] : memref<1x1x32xf32, #tpu.memory_space<vmem>>, vector<1x1x32xf32>
    %84 = vector.shape_cast %83 : vector<1x1x32xf32> to vector<1x32xf32>
    %cst_26 = arith.constant dense<0.000000e+00> : vector<64xf32>
    %85 = vector.multi_reduction <add>, %80, %cst_26 [1] : vector<64x32xf32> to vector<64xf32>
    %86 = vector.shape_cast %85 : vector<64xf32> to vector<64x1xf32>
    %cst_27 = arith.constant 3.200000e+01 : f32
    %87 = vector.broadcast %cst_27 : f32 to vector<64x1xf32>
    %88 = arith.divf %86, %87 : vector<64x1xf32>
    %89 = vector.broadcast %88 : vector<64x1xf32> to vector<64x32xf32>
    %90 = arith.subf %80, %89 : vector<64x32xf32>
    %91 = arith.mulf %90, %90 : vector<64x32xf32>
    %cst_28 = arith.constant dense<0.000000e+00> : vector<64xf32>
    %92 = vector.multi_reduction <add>, %91, %cst_28 [1] : vector<64x32xf32> to vector<64xf32>
    %93 = vector.shape_cast %92 : vector<64xf32> to vector<64x1xf32>
    %cst_29 = arith.constant 3.200000e+01 : f32
    %94 = vector.broadcast %cst_29 : f32 to vector<64x1xf32>
    %95 = arith.divf %93, %94 : vector<64x1xf32>
    %96 = vector.broadcast %88 : vector<64x1xf32> to vector<64x32xf32>
    %97 = arith.subf %80, %96 : vector<64x32xf32>
    %cst_30 = arith.constant 9.99999974E-6 : f32
    %98 = vector.broadcast %cst_30 : f32 to vector<64x1xf32>
    %99 = arith.addf %95, %98 : vector<64x1xf32>
    %100 = math.rsqrt %99 : vector<64x1xf32>
    %101 = vector.broadcast %100 : vector<64x1xf32> to vector<64x32xf32>
    %102 = arith.mulf %97, %101 : vector<64x32xf32>
    %103 = vector.broadcast %82 : vector<1x32xf32> to vector<64x32xf32>
    %104 = arith.mulf %102, %103 : vector<64x32xf32>
    %105 = vector.broadcast %84 : vector<1x32xf32> to vector<64x32xf32>
    %106 = arith.addf %104, %105 : vector<64x32xf32>
    %107 = arith.truncf %106 : vector<64x32xf32> to vector<64x32xbf16>
    %c0_31 = arith.constant 0 : index
    %c0_32 = arith.constant 0 : index
    %c0_33 = arith.constant 0 : index
    %108 = vector.load %arg9[%c0_31, %c0_32, %c0_33] : memref<1x32x64xbf16, #tpu.memory_space<vmem>>, vector<1x32x64xbf16>
    %109 = vector.shape_cast %108 : vector<1x32x64xbf16> to vector<32x64xbf16>
    %cst_34 = arith.constant dense<0.000000e+00> : vector<64x64xf32>
    %110 = tpu.matmul %107, %109, %cst_34 {dimension_numbers = #tpu.dot_dimension_numbers<[1], [0], [0], [1], [0, 0, 1, 1], [], []>} : vector<64x32xbf16>, vector<32x64xbf16>, vector<64x64xf32> -> vector<64x64xf32>
    %c0_35 = arith.constant 0 : index
    %c0_36 = arith.constant 0 : index
    %c0_37 = arith.constant 0 : index
    %111 = vector.load %arg10[%c0_35, %c0_36, %c0_37] : memref<1x1x64xf32, #tpu.memory_space<vmem>>, vector<1x1x64xf32>
    %112 = vector.shape_cast %111 : vector<1x1x64xf32> to vector<1x64xf32>
    %113 = vector.broadcast %112 : vector<1x64xf32> to vector<64x64xf32>
    %114 = arith.addf %110, %113 : vector<64x64xf32>
    %cst_38 = arith.constant 0.000000e+00 : f32
    %115 = vector.broadcast %cst_38 : f32 to vector<64x64xf32>
    %116 = arith.maximumf %114, %115 : vector<64x64xf32>
    %117 = arith.truncf %116 : vector<64x64xf32> to vector<64x64xbf16>
    %c0_39 = arith.constant 0 : index
    %c0_40 = arith.constant 0 : index
    %c0_41 = arith.constant 0 : index
    %118 = vector.load %arg11[%c0_39, %c0_40, %c0_41] : memref<1x64x32xbf16, #tpu.memory_space<vmem>>, vector<1x64x32xbf16>
    %119 = vector.shape_cast %118 : vector<1x64x32xbf16> to vector<64x32xbf16>
    %cst_42 = arith.constant dense<0.000000e+00> : vector<64x32xf32>
    %120 = tpu.matmul %117, %119, %cst_42 {dimension_numbers = #tpu.dot_dimension_numbers<[1], [0], [0], [1], [0, 0, 1, 1], [], []>} : vector<64x64xbf16>, vector<64x32xbf16>, vector<64x32xf32> -> vector<64x32xf32>
    %c0_43 = arith.constant 0 : index
    %c0_44 = arith.constant 0 : index
    %c0_45 = arith.constant 0 : index
    %121 = vector.load %arg12[%c0_43, %c0_44, %c0_45] : memref<1x1x32xf32, #tpu.memory_space<vmem>>, vector<1x1x32xf32>
    %122 = vector.shape_cast %121 : vector<1x1x32xf32> to vector<1x32xf32>
    %123 = vector.broadcast %122 : vector<1x32xf32> to vector<64x32xf32>
    %124 = arith.addf %120, %123 : vector<64x32xf32>
    %125 = arith.addf %106, %124 : vector<64x32xf32>
    %c0_46 = arith.constant 0 : index
    %c0_47 = arith.constant 0 : index
    %c0_48 = arith.constant 0 : index
    %126 = vector.load %arg13[%c0_46, %c0_47, %c0_48] : memref<1x1x32xf32, #tpu.memory_space<vmem>>, vector<1x1x32xf32>
    %127 = vector.shape_cast %126 : vector<1x1x32xf32> to vector<1x32xf32>
    %c0_49 = arith.constant 0 : index
    %c0_50 = arith.constant 0 : index
    %c0_51 = arith.constant 0 : index
    %128 = vector.load %arg14[%c0_49, %c0_50, %c0_51] : memref<1x1x32xf32, #tpu.memory_space<vmem>>, vector<1x1x32xf32>
    %129 = vector.shape_cast %128 : vector<1x1x32xf32> to vector<1x32xf32>
    %cst_52 = arith.constant dense<0.000000e+00> : vector<64xf32>
    %130 = vector.multi_reduction <add>, %125, %cst_52 [1] : vector<64x32xf32> to vector<64xf32>
    %131 = vector.shape_cast %130 : vector<64xf32> to vector<64x1xf32>
    %cst_53 = arith.constant 3.200000e+01 : f32
    %132 = vector.broadcast %cst_53 : f32 to vector<64x1xf32>
    %133 = arith.divf %131, %132 : vector<64x1xf32>
    %134 = vector.broadcast %133 : vector<64x1xf32> to vector<64x32xf32>
    %135 = arith.subf %125, %134 : vector<64x32xf32>
    %136 = arith.mulf %135, %135 : vector<64x32xf32>
    %cst_54 = arith.constant dense<0.000000e+00> : vector<64xf32>
    %137 = vector.multi_reduction <add>, %136, %cst_54 [1] : vector<64x32xf32> to vector<64xf32>
    %138 = vector.shape_cast %137 : vector<64xf32> to vector<64x1xf32>
    %cst_55 = arith.constant 3.200000e+01 : f32
    %139 = vector.broadcast %cst_55 : f32 to vector<64x1xf32>
    %140 = arith.divf %138, %139 : vector<64x1xf32>
    %141 = vector.broadcast %133 : vector<64x1xf32> to vector<64x32xf32>
    %142 = arith.subf %125, %141 : vector<64x32xf32>
    %cst_56 = arith.constant 9.99999974E-6 : f32
    %143 = vector.broadcast %cst_56 : f32 to vector<64x1xf32>
    %144 = arith.addf %140, %143 : vector<64x1xf32>
    %145 = math.rsqrt %144 : vector<64x1xf32>
    %146 = vector.broadcast %145 : vector<64x1xf32> to vector<64x32xf32>
    %147 = arith.mulf %142, %146 : vector<64x32xf32>
    %148 = vector.broadcast %127 : vector<1x32xf32> to vector<64x32xf32>
    %149 = arith.mulf %147, %148 : vector<64x32xf32>
    %150 = vector.broadcast %129 : vector<1x32xf32> to vector<64x32xf32>
    %151 = arith.addf %149, %150 : vector<64x32xf32>
    %c0_57 = arith.constant 0 : index
    %c0_58 = arith.constant 0 : index
    %152 = vector.load %arg18[%c0_57, %c0_58] : memref<64x32xf32, #tpu.memory_space<vmem>>, vector<64x32xf32>
    tpu.vector_store %arg18[%c0_57, %c0_58], %151 {strides = array<i32>} : memref<64x32xf32, #tpu.memory_space<vmem>>, vector<64x32xf32>,
    %c1_i32 = arith.constant 1 : i32
    %153 = arith.cmpi eq, %arg1, %c1_i32 : i32
    %154 = arith.extui %153 : i1 to i32
    %c0_i32_59 = arith.constant 0 : i32
    %155 = arith.cmpi ne, %154, %c0_i32_59 : i32
    scf.if %155 {
      %156 = vector.shape_cast %151 : vector<64x32xf32> to vector<2x32x32xf32>
      %cst_60 = arith.constant dense<0.000000e+00> : vector<2x32xf32>
      %157 = vector.multi_reduction <add>, %156, %cst_60 [1] : vector<2x32x32xf32> to vector<2x32xf32>
      %cst_61 = arith.constant 3.125000e-02 : f32
      %158 = vector.broadcast %cst_61 : f32 to vector<2x32xf32>
      %159 = arith.mulf %157, %158 : vector<2x32xf32>
      %c0_62 = arith.constant 0 : index
      %c0_63 = arith.constant 0 : index
      %160 = vector.load %arg15[%c0_62, %c0_63] : memref<32x8xf32, #tpu.memory_space<vmem>>, vector<32x8xf32>
      %cst_64 = arith.constant dense<0.000000e+00> : vector<2x8xf32>
      %161 = tpu.matmul %159, %160, %cst_64 {dimension_numbers = #tpu.dot_dimension_numbers<[1], [0], [0], [1], [0, 0, 1, 1], [], []>} : vector<2x32xf32>, vector<32x8xf32>, vector<2x8xf32> -> vector<2x8xf32>
      %c0_65 = arith.constant 0 : index
      %c0_66 = arith.constant 0 : index
      %162 = vector.load %arg16[%c0_65, %c0_66] : memref<1x8xf32, #tpu.memory_space<vmem>>, vector<1x8xf32>
      %163 = vector.broadcast %162 : vector<1x8xf32> to vector<2x8xf32>
      %164 = arith.addf %161, %163 : vector<2x8xf32>
      %165 = vector.shape_cast %164 : vector<2x8xf32> to vector<2x1x8xf32>
      %c0_67 = arith.constant 0 : index
      %c0_68 = arith.constant 0 : index
      %c0_69 = arith.constant 0 : index
      %166 = vector.load %arg17[%c0_67, %c0_68, %c0_69] : memref<2x1x8xf32, #tpu.memory_space<vmem>>, vector<2x1x8xf32>
      tpu.vector_store %arg17[%c0_67, %c0_68, %c0_69], %165 {strides = array<i32>} : memref<2x1x8xf32, #tpu.memory_space<vmem>>, vector<2x1x8xf32>,
    } else {
    }
    return
  }
  func.func @transform_0(%arg0: i32, %arg1: i32) -> (i32, i32, i32) {
    %c0_i32 = arith.constant 0 : i32
    %c0_i32_0 = arith.constant 0 : i32
    %c0_i32_1 = arith.constant 0 : i32
    return %arg0, %c0_i32, %c0_i32_0 : i32, i32, i32
  }
  func.func @transform_1(%arg0: i32, %arg1: i32) -> (i32, i32, i32) {
    %c0_i32 = arith.constant 0 : i32
    %c0_i32_0 = arith.constant 0 : i32
    %c0_i32_1 = arith.constant 0 : i32
    return %arg1, %c0_i32, %c0_i32_0 : i32, i32, i32
  }
  func.func @transform_2(%arg0: i32, %arg1: i32) -> (i32, i32, i32) {
    %c0_i32 = arith.constant 0 : i32
    %c0_i32_0 = arith.constant 0 : i32
    %c0_i32_1 = arith.constant 0 : i32
    return %arg1, %c0_i32, %c0_i32_0 : i32, i32, i32
  }
  func.func @transform_3(%arg0: i32, %arg1: i32) -> (i32, i32, i32) {
    %c0_i32 = arith.constant 0 : i32
    %c0_i32_0 = arith.constant 0 : i32
    %c0_i32_1 = arith.constant 0 : i32
    return %arg1, %c0_i32, %c0_i32_0 : i32, i32, i32
  }
  func.func @transform_4(%arg0: i32, %arg1: i32) -> (i32, i32, i32) {
    %c0_i32 = arith.constant 0 : i32
    %c0_i32_0 = arith.constant 0 : i32
    %c0_i32_1 = arith.constant 0 : i32
    return %arg1, %c0_i32, %c0_i32_0 : i32, i32, i32
  }
  func.func @transform_5(%arg0: i32, %arg1: i32) -> (i32, i32, i32) {
    %c0_i32 = arith.constant 0 : i32
    %c0_i32_0 = arith.constant 0 : i32
    %c0_i32_1 = arith.constant 0 : i32
    return %arg1, %c0_i32, %c0_i32_0 : i32, i32, i32
  }
  func.func @transform_6(%arg0: i32, %arg1: i32) -> (i32, i32, i32) {
    %c0_i32 = arith.constant 0 : i32
    %c0_i32_0 = arith.constant 0 : i32
    %c0_i32_1 = arith.constant 0 : i32
    return %arg1, %c0_i32, %c0_i32_0 : i32, i32, i32
  }
  func.func @transform_7(%arg0: i32, %arg1: i32) -> (i32, i32, i32) {
    %c0_i32 = arith.constant 0 : i32
    %c0_i32_0 = arith.constant 0 : i32
    %c0_i32_1 = arith.constant 0 : i32
    return %arg1, %c0_i32, %c0_i32_0 : i32, i32, i32
  }
  func.func @transform_8(%arg0: i32, %arg1: i32) -> (i32, i32, i32) {
    %c0_i32 = arith.constant 0 : i32
    %c0_i32_0 = arith.constant 0 : i32
    %c0_i32_1 = arith.constant 0 : i32
    return %arg1, %c0_i32, %c0_i32_0 : i32, i32, i32
  }
  func.func @transform_9(%arg0: i32, %arg1: i32) -> (i32, i32, i32) {
    %c0_i32 = arith.constant 0 : i32
    %c0_i32_0 = arith.constant 0 : i32
    %c0_i32_1 = arith.constant 0 : i32
    return %arg1, %c0_i32, %c0_i32_0 : i32, i32, i32
  }
  func.func @transform_10(%arg0: i32, %arg1: i32) -> (i32, i32, i32) {
    %c0_i32 = arith.constant 0 : i32
    %c0_i32_0 = arith.constant 0 : i32
    %c0_i32_1 = arith.constant 0 : i32
    return %arg1, %c0_i32, %c0_i32_0 : i32, i32, i32
  }
  func.func @transform_11(%arg0: i32, %arg1: i32) -> (i32, i32, i32) {
    %c0_i32 = arith.constant 0 : i32
    %c0_i32_0 = arith.constant 0 : i32
    %c0_i32_1 = arith.constant 0 : i32
    return %arg1, %c0_i32, %c0_i32_0 : i32, i32, i32
  }
  func.func @transform_12(%arg0: i32, %arg1: i32) -> (i32, i32, i32) {
    %c0_i32 = arith.constant 0 : i32
    %c0_i32_0 = arith.constant 0 : i32
    %c0_i32_1 = arith.constant 0 : i32
    return %arg1, %c0_i32, %c0_i32_0 : i32, i32, i32
  }
  func.func @transform_13(%arg0: i32, %arg1: i32) -> (i32, i32) {
    %c0_i32 = arith.constant 0 : i32
    %c0_i32_0 = arith.constant 0 : i32
    %c0_i32_1 = arith.constant 0 : i32
    return %c0_i32, %c0_i32_0 : i32, i32
  }
  func.func @transform_14(%arg0: i32, %arg1: i32) -> (i32, i32) {
    %c0_i32 = arith.constant 0 : i32
    %c0_i32_0 = arith.constant 0 : i32
    %c0_i32_1 = arith.constant 0 : i32
    return %c0_i32, %c0_i32_0 : i32, i32
  }
  func.func @transform_15(%arg0: i32, %arg1: i32) -> (i32, i32, i32) {
    %c0_i32 = arith.constant 0 : i32
    %c0_i32_0 = arith.constant 0 : i32
    %c0_i32_1 = arith.constant 0 : i32
    return %arg0, %c0_i32, %c0_i32_0 : i32, i32, i32
  }
}

</mosaic_0001>

<bundles_post_ra>
// kernel: _device_forward.1
= control target key start
LH: loop header
LB: loop body
LE: loop exit
PB: predicated region body
PF: predicated region fallthrough
CT: control target
= control target key end

     0   :  { %s5334_s0 = inlined_call_operand.vmem [shape: f32[2,32,32], index: 0, kind: input, shape index: {}]   ;;  %s5335_s1 = inlined_call_operand.vmem [shape: bf16[2,32,96], index: 1, kind: input, shape index: {}]   ;;  %s5336_s2 = inlined_call_operand.vmem [shape: f32[2,1,96], index: 2, kind: input, shape index: {}]   ;;  %s5337_s3 = inlined_call_operand.vmem [shape: bf16[2,32,32], index: 3, kind: input, shape index: {}]   ;;  %s5338_s4 = inlined_call_operand.vmem [shape: f32[2,1,32], index: 4, kind: input, shape index: {}]   ;;  %s5339_s5 = inlined_call_operand.vmem [shape: f32[2,1,32], index: 5, kind: input, shape index: {}]   ;;  %s5340_s6 = inlined_call_operand.vmem [shape: f32[2,1,32], index: 6, kind: input, shape index: {}]   ;;  %s5341_s7 = inlined_call_operand.vmem [shape: bf16[2,32,64], index: 7, kind: input, shape index: {}]   ;;  %s5342_s8 = inlined_call_operand.vmem [shape: f32[2,1,64], index: 8, kind: input, shape index: {}]   ;;  %s5343_s9 = inlined_call_operand.vmem [shape: bf16[2,64,32], index: 9, kind: input, shape index: {}]   ;;  %s5344_s10 = inlined_call_operand.vmem [shape: f32[2,1,32], index: 10, kind: input, shape index: {}]   ;;  %s5345_s11 = inlined_call_operand.vmem [shape: f32[2,1,32], index: 11, kind: input, shape index: {}]   ;;  %s5346_s12 = inlined_call_operand.vmem [shape: f32[2,1,32], index: 12, kind: input, shape index: {}]   ;;  %s5347_s13 = inlined_call_operand.vmem [shape: f32[32,8], index: 13, kind: input, shape index: {}]   ;;  %s5348_s14 = inlined_call_operand.vmem [shape: f32[1,8], index: 14, kind: input, shape index: {}]   ;;  %s5349_s15 = inlined_call_operand.hbm [shape: f32[2,1,8], index: 15, kind: output, shape index: {}]  }
   0x1   :  { %5355 = sst [smem:[#allocation10_spill]] %s5335_s1 }
   0x2   :  { %5356 = sst [smem:[#allocation11_spill]] %s5337_s3 }
   0x3   :  { %5357 = sst [smem:[#allocation12_spill]] %s5347_s13 }
   0x4   :  { %5358 = sst [smem:[#allocation13_spill]] %s5348_s14 }
   0x5   :  { %5359 = sst [smem:[#allocation14_spill]] %s5349_s15 }
   0x6   :  { %20 = vsyncpa [#allocation4], 0  ;;  %s4281_s18 = smov 0   ;;  %s4283_s19 = smov 0  }
   0x7   :  { %s4285_s20 = smov 0  }
   0x8 LB: > { %5360 = sst [smem:[#allocation6_spill]] %s4181_s19  ;;  %s35_s22 = sadd.s32 1, %s4181_s19  ;;  %s4185_s20 = sphi %s4285_s20, %s26_s20   ;;  %s4181_s19 = sphi %s4283_s19, %s5379_s19   ;;  %s4177_s18 = sphi %s4281_s18, %s5378_s18  }
   0x9   : > { %5361 = sst [smem:[#allocation7_spill]] %s4185_s20  ;;  %p36_p0 = scmp.ge.s32.totalorder %s35_s22, 2 }
   0xa   : > { %p3456_p1 = scmp.ge.s32.totalorder %s4185_s20, 1  ;;  %p556_p2 = scmp.lt.s32.totalorder %s4185_s20, 3 }
   0xb   : > { %s5381_s22 = smov (%p36_p0, %s35_s22), 0 }
   0xc   : > { %5362 = sst [smem:[#allocation8_spill]] %s5381_s22  ;;  %p557_p3 = pnand %p3456_p1, %p556_p2 }
   0xe   : > { %560 = sbr.rel (%p557_p3) target bundleno = 3050 (0xbea), region = 80 }
  0x15   : > { %p651_p4 = scmp.lt.s32.totalorder %s4177_s18, 1  ;;  %s5363_s1 = sld [smem:[#allocation10_spill]] }
  0x16   : > { %s5364_s3 = sld [smem:[#allocation11_spill]]  ;;  %p3465_p5 = scmp.ne.s32.totalorder %s4177_s18, 0 }
  0x17   : > { %s4304_s23 = scalar_select %p651_p4, %s4177_s18, 1 }
  0x18   : > { %700 = sbr.rel (%p3465_p5) target bundleno = 31 (0x1f), region = 84  ;;  %v701_v0 = vld [vmem:[%s5334_s0] sm:$0xff] (!%p3465_p5)  ;;  %vm709_vm0 = vcmask (!%p3465_p5), 261120   ;;  %v702_v1 = vld [vmem:[%s5334_s0 + $0x8] sm:$0xff] (!%p3465_p5)  ;;  %v703_v2 = vld [vmem:[%s5334_s0 + $0x10] sm:$0xff] (!%p3465_p5) }
  0x19   : > { %s3539_s24 = sshll.u32 %s4304_s23, 4  ;;  %s688_s25 = scalar_lea.vmem %s5344_s10, %s4304_s23  ;;  %710 = vst.msk [vmem:[#allocation2] sm:$0xff] (!%p3465_p5), %vm709_vm0, %v701_v0  ;;  %711 = vst.msk [vmem:[#allocation2 + $0x8] sm:$0xff] (!%p3465_p5), %vm709_vm0, %v702_v1  ;;  %v704_v3 = vld [vmem:[%s5334_s0 + $0x18] sm:$0xff] (!%p3465_p5)  ;;  %v705_v4 = vld [vmem:[%s5334_s0 + $0x20] sm:$0xff] (!%p3465_p5) }
  0x1a   : > { %s691_s28 = scalar_lea.vmem %s5345_s11, %s4304_s23  ;;  %s694_s13 = scalar_lea.vmem %s5346_s12, %s4304_s23  ;;  %712 = vst.msk [vmem:[#allocation2 + $0x10] sm:$0xff] (!%p3465_p5), %vm709_vm0, %v703_v2  ;;  %v706_v5 = vld [vmem:[%s5334_s0 + $0x28] sm:$0xff] (!%p3465_p5)  ;;  %713 = vst.msk [vmem:[#allocation2 + $0x18] sm:$0xff] (!%p3465_p5), %vm709_vm0, %v704_v3  ;;  %v707_v6 = vld [vmem:[%s5334_s0 + $0x30] sm:$0xff] (!%p3465_p5) }
  0x1b   : > { %s4314_s30 = scalar_lea.vmem %s5363_s1, %s3539_s24  ;;  %s4336_s1 = scalar_lea.vmem %s5341_s7, %s3539_s24  ;;  %714 = vst.msk [vmem:[#allocation2 + $0x20] sm:$0xff] (!%p3465_p5), %vm709_vm0, %v705_v4  ;;  %715 = vst.msk [vmem:[#allocation2 + $0x28] sm:$0xff] (!%p3465_p5), %vm709_vm0, %v706_v5  ;;  %v708_v7 = vld [vmem:[%s5334_s0 + $0x38] sm:$0xff] (!%p3465_p5) }
  0x1c   : > { %s4319_s21 = scalar_lea.vmem %s5364_s3, %s3539_s24  ;;  %s680_s3 = scalar_lea.vmem %s5342_s8, %s4304_s23  ;;  %716 = vst.msk [vmem:[#allocation2 + $0x30] sm:$0xff] (!%p3465_p5), %vm709_vm0, %v707_v6  ;;  %717 = vst.msk [vmem:[#allocation2 + $0x38] sm:$0xff] (!%p3465_p5), %vm709_vm0, %v708_v7 }
  0x1d   : > { %5365 = sst [smem:[#allocation9_spill]] %s4319_s21  ;;  %s3542_s21 = sshll.u32 %s4304_s23, 5 }
  0x1e   : > { %s4346_s15 = scalar_lea.vmem %s5343_s9, %s3542_s21 }
  0x1f PF: > { %v3955_v8 = vld [vmem:[%s4314_s30] sm:$0xff]   ;;  %v3956_v9 = vld [vmem:[%s4314_s30 + $0x8] sm:$0xff]   ;;  %vm753_vm1 = vcmask 261120   ;;  %s5366_s27 = scalar_lea.vmem %s5336_s2, %s4304_s23  ;;  %s4187_s20 = smov 120   ;;  %vm981_vm2 = vcmask 64512   ;;  %vm2472_vm3 = vcmask 130048  }
  0x20   : > { %3638 = vmatprep.subr.bf16.mxu0 %v3955_v8  ;;  %v718_v10 = vld [vmem:[#allocation2] sm:$0xff]  ;;  %v719_v11 = vld [vmem:[#allocation2 + $0x8] sm:$0xff]  ;;  %s4188_s26 = smov 112   ;;  %s4189_s24 = smov 104   ;;  %vm2481_vm4 = vcmask 195584   ;;  %vm2892_vm5 = vcmask 523264  }
  0x21   : > { %3639 = vmatpush3.bf16.msra.mxu0 %v3955_v8  ;;  %v726_v12 = vpack.c.bf16 %v719_v11, %v718_v10  ;;  %v720_v13 = vld [vmem:[#allocation2 + $0x10] sm:$0xff]  ;;  %v721_v14 = vld [vmem:[#allocation2 + $0x18] sm:$0xff]  ;;  %v3466_v22 = vld [vmem:[%s5366_s27] ss:$0 sm:$0xff]  ;;  %s4190_s29 = smov 96   ;;  %s4191_s16 = smov 64  }
  0x22   : > { %3640 = vmatprep.subr.bf16.mxu0 %v3956_v9  ;;  %v722_v15 = vld [vmem:[#allocation2 + $0x20] sm:$0xff]  ;;  %v723_v16 = vld [vmem:[#allocation2 + $0x28] sm:$0xff]  ;;  %v727_v17 = vpack.c.bf16 %v721_v14, %v720_v13  ;;  %s5367_s17 = sld [smem:[#allocation9_spill]]  ;;  %s4192_s21 = smov 8  }
  0x23   : > { %3642 = vmatprep.mubr.msk.bf16.mxu0 %vm753_vm1, %v726_v12  ;;  %v728_v18 = vpack.c.bf16 %v723_v16, %v722_v15  ;;  %v724_v19 = vld [vmem:[#allocation2 + $0x30] sm:$0xff]  ;;  %v725_v20 = vld [vmem:[#allocation2 + $0x38] sm:$0xff]  ;;  %s4193_s19 = smov 16   ;;  %s4194_s22 = smov 24  }
  0x24   : > { %v729_v21 = vpack.c.bf16 %v725_v20, %v724_v19  ;;  %s5368_s27 = scalar_lea.vmem %s5338_s4, %s4304_s23  ;;  %p3532_p6 = scmp.ne.s32.totalorder %s4177_s18, 1 }
  0x25   : > { %3641 = vmatpush3.bf16.msra.mxu0 %v3956_v9  ;;  %vm4196_vm6 = vmmov (!%p3532_p6), 0   ;;  %vm3165_vm7 = vcmask (!%p3532_p6), 1041409   ;;  %vm3264_vm8 = vcmask (!%p3532_p6), 57344  }
  0x28   : > { %3643 = vmatmul.mubr.msk.bf16.vlgmr.msra.gmra.mrb[0].mxu0 %vm753_vm1, %v727_v17 }
  0x29   : > { %3646 = vmatprep.mubr.msk.bf16.mxu0 %vm753_vm1, %v728_v18 }
  0x30   : > { %3647 = vmatmul.mubr.msk.bf16.gmra.mrb[4].mxu0 %vm753_vm1, %v729_v21 }
  0xfb   : > { %v3644_v23 = vpop.f32.mrb[0].mxu0 }
  0xfc   : > { %v809_v24 = vadd.f32 %v3644_v23, %v3466_v22  ;;  %v800_v25 = vpop.f32.mrb[1].mxu0 }
  0xfd   : > { %v801_v26 = vadd.f32 %v3466_v22, %v800_v25  ;;  %v3645_v27 = vpop.f32.mrb[2].mxu0 }
  0xfe   : > { %v812_v28 = vadd.f32 %v3645_v27, %v3466_v22  ;;  %843 = vrot.lane.b32.xlu1 %v809_v24, %s4187_s20  ;;  %v803_v29 = vpop.f32.mrb[3].mxu0  ;;  %v4400_v32 = vmul.f32 0.35355338, %v809_v24 }
  0xff   : > { %v804_v30 = vadd.f32 %v3466_v22, %v803_v29  ;;  %839 = vrot.lane.b32.xlu0 %v801_v26, %s4187_s20  ;;  %v911_v34 = vmul.f32 0.35355338, %v801_v26 }
 0x100   : > { %v4398_v31 = vpack.c.bf16 %v812_v28, %v809_v24  ;;  %v4402_v33 = vmul.f32 0.35355338, %v812_v28 }
 0x101   : > { %v912_v35 = vmul.f32 0.35355338, %v804_v30  ;;  %v4404_v36 = vpack.c.bf16 %v804_v30, %v801_v26 }
 0x102   : > { %845 = vrot.lane.b32.xlu1 %v812_v28, %s4187_s20  ;;  %v944_v37 = vpack.c.bf16 %v4402_v33, %v4400_v32 }
 0x103   : > { %841 = vrot.lane.b32.xlu0 %v804_v30, %s4187_s20  ;;  %v943_v38 = vpack.c.bf16 %v912_v35, %v911_v34  ;;  %v3648_v39 = vpop.f32.mrb[4].mxu0 }
 0x104   : > { %v825_v40 = vadd.f32 %v3648_v39, %v3466_v22  ;;  %v816_v41 = vpop.f32.mrb[5].mxu0 }
 0x105   : > { %3654 = vmatprep.mubr.msk.bf16.mxu1 %vm981_vm2, %v943_v38  ;;  %v817_v42 = vadd.f32 %v3466_v22, %v816_v41  ;;  %v3649_v43 = vpop.f32.mrb[6].mxu0 }
 0x106   : > { %865 = vrot.lane.b32.xlu1 %v804_v30, %s4188_s26  ;;  %v4411_v44 = vmul.f32 0.35355338, %v825_v40  ;;  %v828_v45 = vadd.f32 %v3649_v43, %v3466_v22  ;;  %v819_v46 = vpop.f32.mrb[7].mxu0 }
 0x107   : > { %863 = vrot.lane.b32.xlu0 %v801_v26, %s4188_s26  ;;  %v820_v47 = vadd.f32 %v3466_v22, %v819_v46  ;;  %v4413_v48 = vmul.f32 0.35355338, %v817_v42 }
 0x108   : > { %v4415_v49 = vmul.f32 0.35355338, %v828_v45  ;;  %v4417_v50 = vpack.c.bf16 %v828_v45, %v825_v40 }
 0x109   : > { %v4419_v51 = vpack.c.bf16 %v820_v47, %v817_v42  ;;  %v4421_v52 = vmul.f32 0.35355338, %v820_v47 }
 0x10a   : > { %889 = vrot.lane.b32.xlu1 %v804_v30, %s4189_s24  ;;  %v952_v53 = vpack.c.bf16 %v4415_v49, %v4411_v44 }
 0x10b   : > { %887 = vrot.lane.b32.xlu0 %v801_v26, %s4189_s24  ;;  %v951_v54 = vpack.c.bf16 %v4421_v52, %v4413_v48 }
 0x10e   : > { %869 = vrot.lane.b32.xlu1 %v812_v28, %s4188_s26 }
 0x10f   : > { %867 = vrot.lane.b32.xlu0 %v809_v24, %s4188_s26 }
 0x112   : > { %893 = vrot.lane.b32.xlu1 %v812_v28, %s4189_s24 }
 0x113   : > { %891 = vrot.lane.b32.xlu0 %v809_v24, %s4189_s24 }
 0x116   : > { %849 = vrot.lane.b32.xlu1 %v820_v47, %s4187_s20 }
 0x117   : > { %847 = vrot.lane.b32.xlu0 %v817_v42, %s4187_s20 }
 0x11a   : > { %853 = vrot.lane.b32.xlu1 %v828_v45, %s4187_s20 }
 0x11b   : > { %851 = vrot.lane.b32.xlu0 %v825_v40, %s4187_s20 }
 0x11e   : > { %873 = vrot.lane.b32.xlu1 %v820_v47, %s4188_s26 }
 0x11f   : > { %871 = vrot.lane.b32.xlu0 %v817_v42, %s4188_s26 }
 0x122   : > { %897 = vrot.lane.b32.xlu1 %v820_v47, %s4189_s24 }
 0x123   : > { %895 = vrot.lane.b32.xlu0 %v817_v42, %s4189_s24 }
 0x126   : > { %877 = vrot.lane.b32.xlu1 %v828_v45, %s4188_s26 }
 0x127   : > { %875 = vrot.lane.b32.xlu0 %v825_v40, %s4188_s26  ;;  %s5369_s26 = scalar_lea.vmem %s5339_s5, %s4304_s23 }
 0x12a   : > { %901 = vrot.lane.b32.xlu1 %v828_v45, %s4189_s24 }
 0x12b   : > { %899 = vrot.lane.b32.xlu0 %v825_v40, %s4189_s24 }
 0x12f   : > { %977 = vrot.lane.b32.xlu0 %v4404_v36, %s4190_s29 }
 0x133   : > { %979 = vrot.lane.b32.xlu0 %v4398_v31, %s4190_s29 }
 0x170   : > { %v4435_v55 = vpop.permute.xlu1 %843 }
 0x171   : > { %v840_v56 = vpop.permute.xlu0 %839 }
 0x172   : > { %v915_v59 = vmul.f32 0.35355338, %v840_v56 }
 0x174   : > { %v4437_v57 = vpop.permute.xlu1 %845 }
 0x175   : > { %v842_v58 = vpop.permute.xlu0 %841  ;;  %v962_v1 = vpack.c.bf16 %v4437_v57, %v4435_v55  ;;  %v918_v45 = vmul.f32 0.35355338, %v4437_v57 }
 0x176   : > { %v916_v60 = vmul.f32 0.35355338, %v842_v58  ;;  %v961_v61 = vpack.c.bf16 %v842_v58, %v840_v56 }
 0x178   : > { %v945_v62 = vpack.c.bf16 %v916_v60, %v915_v59  ;;  %v866_v63 = vpop.permute.xlu1 %865  ;;  %1045 = vrot.lane.b32.xlu1 %v961_v61, %s4190_s29 }
 0x179   : > { %v864_v0 = vpop.permute.xlu0 %863  ;;  %v920_v39 = vmul.f32 0.35355338, %v866_v63 }
 0x17a   : > { %v963_v2 = vpack.c.bf16 %v866_v63, %v864_v0  ;;  %3662 = vmatprep.mubr.msk.bf16.mxu0 %vm981_vm2, %v945_v62 }
 0x17c   : > { %v4443_v3 = vpop.permute.xlu1 %889  ;;  %1047 = vrot.lane.b32.xlu1 %v962_v1, %s4190_s29  ;;  %1112 = vrot.lane.b32.xlu0 %v963_v2, %s4190_s29 }
 0x17d   : > { %v4447_v4 = vpop.permute.xlu0 %887  ;;  %v924_v46 = vmul.f32 0.35355338, %v4443_v3 }
 0x17e   : > { %v965_v5 = vpack.c.bf16 %v4443_v3, %v4447_v4  ;;  %v923_v47 = vmul.f32 0.35355338, %v4447_v4 }
 0x180   : > { %v4451_v6 = vpop.permute.xlu1 %869  ;;  %1179 = vrot.lane.b32.xlu1 %v965_v5, %s4190_s29  ;;  %v949_v57 = vpack.c.bf16 %v924_v46, %v923_v47 }
 0x181   : > { %v4454_v7 = vpop.permute.xlu0 %867  ;;  %v922_v59 = vmul.f32 0.35355338, %v4451_v6 }
 0x182   : > { %v964_v8 = vpack.c.bf16 %v4451_v6, %v4454_v7  ;;  %v921_v60 = vmul.f32 0.35355338, %v4454_v7 }
 0x184   : > { %v4458_v9 = vpop.permute.xlu1 %893  ;;  %1114 = vrot.lane.b32.xlu0 %v964_v8, %s4190_s29 }
 0x185   : > { %v4461_v10 = vpop.permute.xlu0 %891  ;;  %v926_v4 = vmul.f32 0.35355338, %v4458_v9 }
 0x186   : > { %v966_v11 = vpack.c.bf16 %v4458_v9, %v4461_v10 }
 0x188   : > { %v4465_v12 = vpop.permute.xlu1 %849  ;;  %1181 = vrot.lane.b32.xlu1 %v966_v11, %s4190_s29  ;;  %1246 = vrot.lane.b32.xlu0 %v4419_v51, %s4190_s29 }
 0x189   : > { %v4470_v13 = vpop.permute.xlu0 %847  ;;  %v932_v6 = vmul.f32 0.35355338, %v4465_v12 }
 0x18a   : > { %v969_v14 = vpack.c.bf16 %v4465_v12, %v4470_v13  ;;  %v931_v7 = vmul.f32 0.35355338, %v4470_v13 }
 0x18c   : > { %v4474_v15 = vpop.permute.xlu1 %853  ;;  %1313 = vrot.lane.b32.xlu1 %v969_v14, %s4190_s29  ;;  %1248 = vrot.lane.b32.xlu0 %v4417_v50, %s4190_s29 }
 0x18d   : > { %v4479_v16 = vpop.permute.xlu0 %851 }
 0x18e   : > { %v970_v17 = vpack.c.bf16 %v4474_v15, %v4479_v16 }
 0x190   : > { %v4483_v18 = vpop.permute.xlu1 %873  ;;  %1315 = vrot.lane.b32.xlu1 %v970_v17, %s4190_s29 }
 0x191   : > { %v4486_v19 = vpop.permute.xlu0 %871 }
 0x192   : > { %v4490_v20 = vpack.c.bf16 %v4483_v18, %v4486_v19  ;;  %v935_v9 = vmul.f32 0.35355338, %v4486_v19 }
 0x194   : > { %v4492_v21 = vpop.permute.xlu1 %897  ;;  %1380 = vrot.lane.b32.xlu0 %v4490_v20, %s4190_s29 }
 0x195   : > { %v4496_v22 = vpop.permute.xlu0 %895  ;;  %v940_v44 = vmul.f32 0.35355338, %v4492_v21 }
 0x196   : > { %v4500_v23 = vpack.c.bf16 %v4492_v21, %v4496_v22  ;;  %v939_v49 = vmul.f32 0.35355338, %v4496_v22 }
 0x198   : > { %v4502_v24 = vpop.permute.xlu1 %877  ;;  %1447 = vrot.lane.b32.xlu1 %v4500_v23, %s4190_s29 }
 0x199   : > { %v4506_v25 = vpop.permute.xlu0 %875 }
 0x19a   : > { %v4510_v26 = vpack.c.bf16 %v4502_v24, %v4506_v25 }
 0x19c   : > { %v4512_v27 = vpop.permute.xlu1 %901  ;;  %1382 = vrot.lane.b32.xlu0 %v4510_v26, %s4190_s29 }
 0x19d   : > { %v4516_v28 = vpop.permute.xlu0 %899 }
 0x19e   : > { %v4520_v29 = vpack.c.bf16 %v4512_v27, %v4516_v28 }
 0x1a0   : > { %1449 = vrot.lane.b32.xlu1 %v4520_v29, %s4190_s29  ;;  %1941 = vrot.lane.b32.xlu0 %v961_v61, %s4191_s16 }
 0x1a1   : > { %v978_v30 = vpop.permute.xlu0 %977 }
 0x1a2   : > { %3835 = vmatprep.subr.msk.bf16.mxu1 %vm981_vm2, %v978_v30  ;;  %v989_v34 = vsel %vm981_vm2, %v978_v30, 0 }
 0x1a3   : > { %3651 = vmatpush3.bf16.xpose.msra.mxu1 %v989_v34  ;;  %v934_v34 = vmul.f32 0.35355338, %v4474_v15 }
 0x1a4   : > { %1880 = vrot.lane.b32.xlu1 %v4404_v36, %s4191_s16  ;;  %1943 = vrot.lane.b32.xlu0 %v962_v1, %s4191_s16  ;;  %v919_v36 = vmul.f32 0.35355338, %v864_v0 }
 0x1a5   : > { %v980_v35 = vpop.permute.xlu0 %979 }
 0x1a6   : > { %3836 = vmatprep.subr.msk.bf16.mxu1 %vm981_vm2, %v980_v35  ;;  %v992_v38 = vsel %vm981_vm2, %v980_v35, 0  ;;  %v947_v40 = vpack.c.bf16 %v920_v39, %v919_v36  ;;  %v933_v35 = vmul.f32 0.35355338, %v4479_v16  ;;  %v938_v36 = vmul.f32 0.35355338, %v4502_v24 }
 0x1a8   : > { %1882 = vrot.lane.b32.xlu1 %v4398_v31, %s4191_s16  ;;  %2004 = vrot.lane.b32.xlu0 %v964_v8, %s4191_s16  ;;  %v953_v8 = vpack.c.bf16 %v932_v6, %v931_v7  ;;  %v954_v39 = vpack.c.bf16 %v934_v34, %v933_v35 }
 0x1ab   : > { %3653 = vmatpush3.bf16.xpose.msra.mxu1 %v992_v38 }
 0x1ac   : > { %2002 = vrot.lane.b32.xlu1 %v963_v2, %s4191_s16  ;;  %2124 = vrot.lane.b32.xlu0 %v4419_v51, %s4191_s16  ;;  %v917_v51 = vmul.f32 0.35355338, %v4435_v55  ;;  %v948_v55 = vpack.c.bf16 %v922_v59, %v921_v60 }
 0x1ae   : > { %v946_v58 = vpack.c.bf16 %v918_v45, %v917_v51 }
 0x1b0   : > { %2063 = vrot.lane.b32.xlu1 %v965_v5, %s4191_s16  ;;  %2126 = vrot.lane.b32.xlu0 %v4417_v50, %s4191_s16  ;;  %v925_v5 = vmul.f32 0.35355338, %v4461_v10 }
 0x1b2   : > { %3655 = vmatmul.mubr.msk.bf16.vlgmr.msra.gmra.mrb[0].mxu1 %vm981_vm2, %v944_v37 }
 0x1b3   : > { %3670 = vmatprep.mubr.msk.bf16.mxu1 %vm981_vm2, %v947_v40  ;;  %v937_v40 = vmul.f32 0.35355338, %v4506_v25 }
 0x1b4   : > { %2065 = vrot.lane.b32.xlu1 %v966_v11, %s4191_s16  ;;  %v936_v11 = vmul.f32 0.35355338, %v4483_v18 }
 0x1b5   : > { %v956_v16 = vpack.c.bf16 %v938_v36, %v937_v40 }
 0x1b6   : > { %v955_v12 = vpack.c.bf16 %v936_v11, %v935_v9 }
 0x1b8   : > { %2187 = vrot.lane.b32.xlu1 %v970_v17, %s4191_s16 }
 0x1bc   : > { %2185 = vrot.lane.b32.xlu1 %v969_v14, %s4191_s16 }
 0x1ea   : > { %v1046_v31 = vpop.permute.xlu1 %1045 }
 0x1eb   : > { %3837 = vmatprep.subr.msk.bf16.mxu0 %vm981_vm2, %v1046_v31  ;;  %v1056_v41 = vsel %vm981_vm2, %v1046_v31, 0  ;;  %v957_v31 = vpack.c.bf16 %v940_v44, %v939_v49 }
 0x1ec   : > { %3659 = vmatpush3.bf16.xpose.msra.mxu0 %v1056_v41  ;;  %v942_v41 = vmul.f32 0.35355338, %v4512_v27 }
 0x1ee   : > { %v1048_v42 = vpop.permute.xlu1 %1047  ;;  %v1113_v43 = vpop.permute.xlu0 %1112 }
 0x1ef   : > { %3838 = vmatprep.subr.msk.bf16.mxu0 %vm981_vm2, %v1048_v42  ;;  %3839 = vmatprep.subr.msk.bf16.mxu1 %vm981_vm2, %v1113_v43  ;;  %v1123_v32 = vsel %vm981_vm2, %v1113_v43, 0  ;;  %v1059_v33 = vsel %vm981_vm2, %v1048_v42, 0  ;;  %v941_v42 = vmul.f32 0.35355338, %v4516_v28 }
 0x1f0   : > { %3667 = vmatpush3.bf16.xpose.msra.mxu1 %v1123_v32 }
 0x1f1   : > { %v958_v43 = vpack.c.bf16 %v942_v41, %v941_v42 }
 0x1f2   : > { %v1180_v37 = vpop.permute.xlu1 %1179 }
 0x1f3   : > { %v1190_v62 = vsel %vm981_vm2, %v1180_v37, 0 }
 0x1f4   : > { %3661 = vmatpush3.bf16.xpose.msra.mxu0 %v1059_v33 }
 0x1f5   : > { %3841 = vmatprep.subr.msk.bf16.mxu0 %vm981_vm2, %v1180_v37 }
 0x1f6   : > { %v1115_v50 = vpop.permute.xlu0 %1114 }
 0x1f7   : > { %3840 = vmatprep.subr.msk.bf16.mxu1 %vm981_vm2, %v1115_v50  ;;  %v1126_v56 = vsel %vm981_vm2, %v1115_v50, 0 }
 0x1f8   : > { %3669 = vmatpush3.bf16.xpose.msra.mxu1 %v1126_v56 }
 0x1fa   : > { %v1247_v61 = vpop.permute.xlu0 %1246  ;;  %v1182_v63 = vpop.permute.xlu1 %1181 }
 0x1fb   : > { %3663 = vmatmul.mubr.msk.bf16.vlgmr.msra.gmra.mrb[8].mxu0 %vm981_vm2, %v946_v58  ;;  %3843 = vmatprep.subr.msk.bf16.mxu1 %vm981_vm2, %v1247_v61  ;;  %v1257_v0 = vsel %vm981_vm2, %v1247_v61, 0  ;;  %v1193_v2 = vsel %vm981_vm2, %v1182_v63, 0 }
 0x1fc   : > { %3675 = vmatpush3.bf16.xpose.msra.mxu0 %v1190_v62  ;;  %3678 = vmatprep.mubr.msk.bf16.mxu0 %vm981_vm2, %v949_v57 }
 0x1fd   : > { %3842 = vmatprep.subr.msk.bf16.mxu0 %vm981_vm2, %v1182_v63 }
 0x1fe   : > { %v1249_v1 = vpop.permute.xlu0 %1248  ;;  %v1314_v3 = vpop.permute.xlu1 %1313 }
 0x1ff   : > { %3671 = vmatmul.mubr.msk.bf16.vlgmr.msra.gmra.mrb[4].mxu1 %vm981_vm2, %v948_v55  ;;  %v1260_v48 = vsel %vm981_vm2, %v1249_v1, 0  ;;  %v1324_v10 = vsel %vm981_vm2, %v1314_v3, 0 }
 0x200   : > { %3683 = vmatpush3.bf16.xpose.msra.mxu1 %v1257_v0  ;;  %3686 = vmatprep.mubr.msk.bf16.mxu1 %vm981_vm2, %v951_v54  ;;  %v950_v54 = vpack.c.bf16 %v926_v4, %v925_v5 }
 0x201   : > { %3844 = vmatprep.subr.msk.bf16.mxu1 %vm981_vm2, %v1249_v1 }
 0x202   : > { %v1316_v14 = vpop.permute.xlu1 %1315 }
 0x203   : > { %v1327_v30 = vsel %vm981_vm2, %v1316_v14, 0 }
 0x204   : > { %3677 = vmatpush3.bf16.xpose.msra.mxu0 %v1193_v2 }
 0x205   : > { %3845 = vmatprep.subr.msk.bf16.mxu0 %vm981_vm2, %v1314_v3 }
 0x206   : > { %v1381_v52 = vpop.permute.xlu0 %1380 }
 0x207   : > { %v1391_v17 = vsel %vm981_vm2, %v1381_v52, 0 }
 0x208   : > { %3685 = vmatpush3.bf16.xpose.msra.mxu1 %v1260_v48 }
 0x209   : > { %3847 = vmatprep.subr.msk.bf16.mxu1 %vm981_vm2, %v1381_v52 }
 0x20a   : > { %v1448_v13 = vpop.permute.xlu1 %1447 }
 0x20b   : > { %3679 = vmatmul.mubr.msk.bf16.vlgmr.msra.gmra.mrb[12].mxu0 %vm981_vm2, %v950_v54  ;;  %v1458_v15 = vsel %vm981_vm2, %v1448_v13, 0 }
 0x20c   : > { %3691 = vmatpush3.bf16.xpose.msra.mxu0 %v1324_v10  ;;  %3694 = vmatprep.mubr.msk.bf16.mxu0 %vm981_vm2, %v953_v8 }
 0x20d   : > { %3846 = vmatprep.subr.msk.bf16.mxu0 %vm981_vm2, %v1316_v14 }
 0x20e   : > { %v1383_v18 = vpop.permute.xlu0 %1382 }
 0x20f   : > { %3687 = vmatmul.mubr.msk.bf16.vlgmr.msra.gmra.mrb[8].mxu1 %vm981_vm2, %v952_v53  ;;  %v1394_v53 = vsel %vm981_vm2, %v1383_v18, 0 }
 0x210   : > { %3699 = vmatpush3.bf16.xpose.msra.mxu1 %v1391_v17  ;;  %3702 = vmatprep.mubr.msk.bf16.mxu1 %vm981_vm2, %v955_v12 }
 0x211   : > { %3848 = vmatprep.subr.msk.bf16.mxu1 %vm981_vm2, %v1383_v18 }
 0x212   : > { %v1450_v19 = vpop.permute.xlu1 %1449  ;;  %v1942_v24 = vpop.permute.xlu0 %1941 }
 0x213   : > { %v1461_v22 = vsel %vm981_vm2, %v1450_v19, 0 }
 0x214   : > { %3693 = vmatpush3.bf16.xpose.msra.mxu0 %v1327_v30 }
 0x215   : > { %3849 = vmatprep.subr.msk.bf16.mxu0 %vm981_vm2, %v1448_v13 }
 0x216   : > { %v1881_v38 = vpop.permute.xlu1 %1880  ;;  %v1944_v32 = vpop.permute.xlu0 %1943 }
 0x218   : > { %3701 = vmatpush3.bf16.xpose.msra.mxu1 %v1394_v53 }
 0x219   : > { %3714 = vmatprep.subr.bf16.mxu1 %v1881_v38 }
 0x21a   : > { %v1883_v21 = vpop.permute.xlu1 %1882 }
 0x21b   : > { %3695 = vmatmul.mubr.msk.bf16.vlgmr.msra.gmra.mrb[16].mxu0 %vm981_vm2, %v954_v39 }
 0x21c   : > { %3707 = vmatpush3.bf16.xpose.msra.mxu0 %v1458_v15  ;;  %3710 = vmatprep.mubr.msk.bf16.mxu0 %vm981_vm2, %v957_v31 }
 0x21d   : > { %3850 = vmatprep.subr.msk.bf16.mxu0 %vm981_vm2, %v1450_v19 }
 0x21e   : > { %v4612_v25 = vpop.permute.xlu1 %2002 }
 0x21f   : > { %3703 = vmatmul.mubr.msk.bf16.vlgmr.msra.gmra.mrb[12].mxu1 %vm981_vm2, %v956_v16 }
 0x220   : > { %3715 = vmatpush3.bf16.msra.mxu1 %v1881_v38 }
 0x221   : > { %3716 = vmatprep.subr.bf16.mxu1 %v1883_v21 }
 0x222   : > { %v4618_v33 = vpop.permute.xlu1 %2063 }
 0x224   : > { %3709 = vmatpush3.bf16.xpose.msra.mxu0 %v1461_v22  ;;  %3717 = vmatpush3.bf16.msra.mxu1 %v1883_v21 }
 0x225   : > { %3722 = vmatprep.subr.bf16.mxu0 %v1942_v24  ;;  %3730 = vmatprep.subr.bf16.mxu1 %v4612_v25 }
 0x22b   : > { %3711 = vmatmul.mubr.msk.bf16.vlgmr.msra.gmra.mrb[20].mxu0 %vm981_vm2, %v958_v43 }
 0x22c   : > { %3723 = vmatpush3.bf16.msra.mxu0 %v1942_v24 }
 0x22d   : > { %3724 = vmatprep.subr.bf16.mxu0 %v1944_v32 }
 0x230   : > { %3725 = vmatpush3.bf16.msra.mxu0 %v1944_v32 }
 0x231   : > { %3738 = vmatprep.subr.bf16.mxu0 %v4618_v33 }
 0x285   : > { %v4621_v37 = vpop.f32.mrb[0].mxu1 }
 0x286   : > { %v4623_v45 = vpop.f32.mrb[1].mxu1  ;;  %v1518_v27 = vsel %vm753_vm1, %v4621_v37, -inf }
 0x287   : > { %1519 = vmax.xlane.f32.xlu0 %v1518_v27  ;;  %v4627_v28 = vpop.f32.mrb[2].mxu1  ;;  %v1512_v50 = vsel %vm753_vm1, %v4623_v45, -inf }
 0x288   : > { %v4629_v46 = vpop.f32.mrb[3].mxu1  ;;  %v1521_v51 = vsel %vm753_vm1, %v4627_v28, -inf }
 0x289   : > { %v1515_v47 = vsel %vm753_vm1, %v4629_v46, -inf }
 0x28a   : > { %1516 = vmax.xlane.f32.xlu1 %v1515_v47 }
 0x28b   : > { %1513 = vmax.xlane.f32.xlu0 %v1512_v50  ;;  %v4741_v50 = vpop.permute.xlu0 %2004 }
 0x28f   : > { %1522 = vmax.xlane.f32.xlu0 %v1521_v51  ;;  %v4743_v51 = vpop.permute.xlu1 %2065 }
 0x2ce   : > { %v4637_v56 = vpop.f32.mrb[8].mxu0 }
 0x2cf   : > { %v4639_v58 = vpop.f32.mrb[9].mxu0  ;;  %v1530_v59 = vsel %vm753_vm1, %v4637_v56, -inf }
 0x2d0   : > { %v4643_v60 = vpop.f32.mrb[10].mxu0  ;;  %1531 = vmax.xlane.f32.xlu1 %v1530_v59  ;;  %v1524_v3 = vsel %vm753_vm1, %v4639_v58, -inf  ;;  %v4745_v59 = vpop.permute.xlu0 %2124 }
 0x2d1   : > { %v4645_v57 = vpop.f32.mrb[11].mxu0  ;;  %v1533_v61 = vsel %vm753_vm1, %v4643_v60, -inf }
 0x2d2   : > { %1534 = vmax.xlane.f32.xlu0 %v1533_v61  ;;  %v4649_v62 = vpop.f32.mrb[4].mxu1  ;;  %v1527_v4 = vsel %vm753_vm1, %v4645_v57, -inf  ;;  %v4747_v61 = vpop.permute.xlu1 %2187 }
 0x2d3   : > { %v4651_v63 = vpop.f32.mrb[5].mxu1  ;;  %v1542_v55 = vsel %vm753_vm1, %v4649_v62, -inf }
 0x2d4   : > { %1543 = vmax.xlane.f32.xlu1 %v1542_v55  ;;  %v4655_v0 = vpop.f32.mrb[6].mxu1  ;;  %v1536_v5 = vsel %vm753_vm1, %v4651_v63, -inf  ;;  %v4749_v55 = vpop.permute.xlu0 %2126 }
 0x2d5   : > { %v4657_v1 = vpop.f32.mrb[7].mxu1  ;;  %v1545_v2 = vsel %vm753_vm1, %v4655_v0, -inf }
 0x2d6   : > { %1546 = vmax.xlane.f32.xlu0 %v1545_v2  ;;  %v1539_v6 = vsel %vm753_vm1, %v4657_v1, -inf  ;;  %v4751_v2 = vpop.permute.xlu1 %2185 }
 0x2d8   : > { %1525 = vmax.xlane.f32.xlu1 %v1524_v3 }
 0x2da   : > { %1528 = vmax.xlane.f32.xlu0 %v1527_v4 }
 0x2dc   : > { %1537 = vmax.xlane.f32.xlu1 %v1536_v5 }
 0x2de   : > { %v4669_v7 = vpop.f32.mrb[12].mxu0  ;;  %1540 = vmax.xlane.f32.xlu0 %v1539_v6 }
 0x2df   : > { %v4671_v48 = vpop.f32.mrb[13].mxu0  ;;  %v1554_v52 = vsel %vm753_vm1, %v4669_v7, -inf }
 0x2e0   : > { %v4675_v54 = vpop.f32.mrb[14].mxu0  ;;  %1555 = vmax.xlane.f32.xlu1 %v1554_v52  ;;  %v1548_v18 = vsel %vm753_vm1, %v4671_v48, -inf }
 0x2e1   : > { %v4677_v8 = vpop.f32.mrb[15].mxu0  ;;  %v1557_v11 = vsel %vm753_vm1, %v4675_v54, -inf }
 0x2e2   : > { %1558 = vmax.xlane.f32.xlu0 %v1557_v11  ;;  %v4681_v9 = vpop.f32.mrb[8].mxu1  ;;  %v1551_v19 = vsel %vm753_vm1, %v4677_v8, -inf }
 0x2e3   : > { %v4683_v14 = vpop.f32.mrb[9].mxu1  ;;  %v1566_v10 = vsel %vm753_vm1, %v4681_v9, -inf }
 0x2e4   : > { %1567 = vmax.xlane.f32.xlu1 %v1566_v10  ;;  %v4687_v12 = vpop.f32.mrb[10].mxu1  ;;  %v1560_v30 = vsel %vm753_vm1, %v4683_v14, -inf }
 0x2e5   : > { %v4689_v13 = vpop.f32.mrb[11].mxu1  ;;  %v1569_v17 = vsel %vm753_vm1, %v4687_v12, -inf }
 0x2e6   : > { %1570 = vmax.xlane.f32.xlu0 %v1569_v17  ;;  %v1563_v34 = vsel %vm753_vm1, %v4689_v13, -inf }
 0x2e8   : > { %1549 = vmax.xlane.f32.xlu1 %v1548_v18 }
 0x2ea   : > { %1552 = vmax.xlane.f32.xlu0 %v1551_v19 }
 0x2ec   : > { %1561 = vmax.xlane.f32.xlu1 %v1560_v30 }
 0x2ee   : > { %v4701_v35 = vpop.f32.mrb[16].mxu0  ;;  %1564 = vmax.xlane.f32.xlu0 %v1563_v34 }
 0x2ef   : > { %v4703_v44 = vpop.f32.mrb[17].mxu0  ;;  %v1578_v49 = vsel %vm753_vm1, %v4701_v35, -inf }
 0x2f0   : > { %v4707_v53 = vpop.f32.mrb[18].mxu0  ;;  %1579 = vmax.xlane.f32.xlu1 %v1578_v49  ;;  %v1572_v22 = vsel %vm753_vm1, %v4703_v44, -inf }
 0x2f1   : > { %v4709_v38 = vpop.f32.mrb[19].mxu0  ;;  %v1581_v39 = vsel %vm753_vm1, %v4707_v53, -inf }
 0x2f2   : > { %1582 = vmax.xlane.f32.xlu0 %v1581_v39  ;;  %v4713_v36 = vpop.f32.mrb[12].mxu1  ;;  %v1575_v24 = vsel %vm753_vm1, %v4709_v38, -inf }
 0x2f3   : > { %v4715_v40 = vpop.f32.mrb[13].mxu1  ;;  %v1590_v31 = vsel %vm753_vm1, %v4713_v36, -inf }
 0x2f4   : > { %1591 = vmax.xlane.f32.xlu1 %v1590_v31  ;;  %v4719_v15 = vpop.f32.mrb[14].mxu1  ;;  %v1584_v41 = vsel %vm753_vm1, %v4715_v40, -inf }
 0x2f5   : > { %v4721_v16 = vpop.f32.mrb[15].mxu1  ;;  %v1593_v21 = vsel %vm753_vm1, %v4719_v15, -inf }
 0x2f6   : > { %1594 = vmax.xlane.f32.xlu0 %v1593_v21  ;;  %v1587_v42 = vsel %vm753_vm1, %v4721_v16, -inf }
 0x2f8   : > { %1573 = vmax.xlane.f32.xlu1 %v1572_v22 }
 0x2fa   : > { %1576 = vmax.xlane.f32.xlu0 %v1575_v24 }
 0x2fc   : > { %1585 = vmax.xlane.f32.xlu1 %v1584_v41 }
 0x2fe   : > { %v4733_v43 = vpop.f32.mrb[20].mxu0  ;;  %1588 = vmax.xlane.f32.xlu0 %v1587_v42 }
 0x2ff   : > { %v4735_v32 = vpop.f32.mrb[21].mxu0 }
 0x300   : > { %v4737_v27 = vpop.f32.mrb[22].mxu0  ;;  %v1596_v22 = vsel %vm753_vm1, %v4735_v32, -inf }
 0x301   : > { %v4739_v47 = vpop.f32.mrb[23].mxu0  ;;  %v1605_v41 = vsel %vm753_vm1, %v4737_v27, -inf }
 0x302   : > { %v1599_v42 = vsel %vm753_vm1, %v4739_v47, -inf }
 0x314   : > { %v1520_v3 = vpop.xlane.xlu0 %1519 }
 0x315   : > { %v1610_v4 = vsub.f32 %v4621_v37, %v1520_v3 }
 0x317   : > { %v1644_v5 = vmul.f32 1.442695, %v1610_v4  ;;  %v1517_v6 = vpop.xlane.xlu1 %1516 }
 0x318   : > { %v1514_v52 = vpop.xlane.xlu0 %1513  ;;  %v1609_v10 = vsub.f32 %v4629_v46, %v1517_v6 }
 0x319   : > { %3965 = vpow2.f32 %v1644_v5  ;;  %v1608_v11 = vsub.f32 %v4623_v45, %v1514_v52 }
 0x31a   : > { %v1642_v30 = vmul.f32 1.442695, %v1609_v10 }
 0x31b   : > { %v1640_v17 = vmul.f32 1.442695, %v1608_v11 }
 0x31c   : > { %v1523_v18 = vpop.xlane.xlu0 %1522 }
 0x31d   : > { %3967 = vpow2.f32 %v1640_v17  ;;  %v1611_v19 = vsub.f32 %v4627_v28, %v1523_v18  ;;  %v1602_v28 = vsel %vm753_vm1, %v4733_v43, -inf }
 0x31f   : > { %v1646_v34 = vmul.f32 1.442695, %v1611_v19 }
 0x321   : > { %3969 = vpow2.f32 %v1646_v34 }
 0x322   : > { %3971 = vpow2.f32 %v1642_v30 }
 0x323   : > { %v4757_v49 = vpop.eup %3965 }
 0x324   : > { %v1710_v37 = vsel %vm753_vm1, %v4757_v49, 0.0 }
 0x325   : > { %1711 = vadd.xlane.f32.xlu1 %v1710_v37 }
 0x327   : > { %v4761_v39 = vpop.eup %3967 }
 0x328   : > { %v1704_v45 = vsel %vm753_vm1, %v4761_v39, 0.0 }
 0x329   : > { %1705 = vadd.xlane.f32.xlu1 %v1704_v45 }
 0x32b   : > { %v4765_v46 = vpop.eup %3969 }
 0x32c   : > { %v1713_v31 = vsel %vm753_vm1, %v4765_v46, 0.0  ;;  %v4771_v21 = vpop.eup %3971 }
 0x32d   : > { %1603 = vmax.xlane.f32.xlu1 %v1602_v28  ;;  %1714 = vadd.xlane.f32.xlu0 %v1713_v31  ;;  %v1707_v24 = vsel %vm753_vm1, %v4771_v21, 0.0 }
 0x331   : > { %1597 = vmax.xlane.f32.xlu1 %v1596_v22  ;;  %1708 = vadd.xlane.f32.xlu0 %v1707_v24 }
 0x335   : > { %1606 = vmax.xlane.f32.xlu0 %v1605_v41 }
 0x339   : > { %1600 = vmax.xlane.f32.xlu0 %v1599_v42 }
 0x342   : > { %2307 = vrot.lane.b32.xlu1 %v4500_v23, %s4191_s16 }
 0x34f   : > { %2246 = vrot.lane.b32.xlu0 %v4490_v20, %s4191_s16 }
 0x35d   : > { %v1532_v3 = vpop.xlane.xlu1 %1531 }
 0x35e   : > { %v1614_v4 = vsub.f32 %v4637_v56, %v1532_v3 }
 0x35f   : > { %v1535_v5 = vpop.xlane.xlu0 %1534 }
 0x360   : > { %v1652_v6 = vmul.f32 1.442695, %v1614_v4  ;;  %v1615_v52 = vsub.f32 %v4643_v60, %v1535_v5 }
 0x361   : > { %v1544_v11 = vpop.xlane.xlu1 %1543 }
 0x362   : > { %3973 = vpow2.f32 %v1652_v6  ;;  %v1654_v10 = vmul.f32 1.442695, %v1615_v52  ;;  %v1618_v17 = vsub.f32 %v4649_v62, %v1544_v11 }
 0x363   : > { %v1547_v18 = vpop.xlane.xlu0 %1546 }
 0x364   : > { %3975 = vpow2.f32 %v1654_v10  ;;  %v1660_v19 = vmul.f32 1.442695, %v1618_v17  ;;  %v1619_v23 = vsub.f32 %v4655_v0, %v1547_v18 }
 0x365   : > { %v1526_v30 = vpop.xlane.xlu1 %1525 }
 0x366   : > { %3977 = vpow2.f32 %v1660_v19  ;;  %v1662_v20 = vmul.f32 1.442695, %v1619_v23  ;;  %v1612_v34 = vsub.f32 %v4639_v58, %v1526_v30 }
 0x367   : > { %v1529_v56 = vpop.xlane.xlu0 %1528 }
 0x368   : > { %3979 = vpow2.f32 %v1662_v20  ;;  %v1648_v37 = vmul.f32 1.442695, %v1612_v34  ;;  %v1613_v60 = vsub.f32 %v4645_v57, %v1529_v56 }
 0x369   : > { %v1538_v45 = vpop.xlane.xlu1 %1537 }
 0x36a   : > { %3981 = vpow2.f32 %v1648_v37  ;;  %v1650_v28 = vmul.f32 1.442695, %v1613_v60  ;;  %v1616_v62 = vsub.f32 %v4651_v63, %v1538_v45 }
 0x36b   : > { %v1541_v31 = vpop.xlane.xlu0 %1540 }
 0x36c   : > { %v4792_v22 = vpop.eup %3973  ;;  %3983 = vpow2.f32 %v1650_v28  ;;  %v1656_v0 = vmul.f32 1.442695, %v1616_v62  ;;  %v1617_v24 = vsub.f32 %v4657_v1, %v1541_v31 }
 0x36d   : > { %v1556_v41 = vpop.xlane.xlu1 %1555  ;;  %v1722_v58 = vsel %vm753_vm1, %v4792_v22, 0.0 }
 0x36e   : > { %v4797_v42 = vpop.eup %3975  ;;  %3985 = vpow2.f32 %v1656_v0  ;;  %v1658_v57 = vmul.f32 1.442695, %v1617_v24  ;;  %v1622_v3 = vsub.f32 %v4669_v7, %v1556_v41  ;;  %1723 = vadd.xlane.f32.xlu1 %v1722_v58 }
 0x36f   : > { %v1559_v4 = vpop.xlane.xlu0 %1558  ;;  %v1725_v63 = vsel %vm753_vm1, %v4797_v42, 0.0 }
 0x370   : > { %v4802_v5 = vpop.eup %3977  ;;  %3987 = vpow2.f32 %v1658_v57  ;;  %v1668_v6 = vmul.f32 1.442695, %v1622_v3  ;;  %v1623_v1 = vsub.f32 %v4675_v54, %v1559_v4  ;;  %1726 = vadd.xlane.f32.xlu0 %v1725_v63 }
 0x371   : > { %v1568_v52 = vpop.xlane.xlu1 %1567  ;;  %v1734_v11 = vsel %vm753_vm1, %v4802_v5, 0.0 }
 0x372   : > { %v4807_v10 = vpop.eup %3979  ;;  %3989 = vpow2.f32 %v1668_v6  ;;  %v1670_v7 = vmul.f32 1.442695, %v1623_v1  ;;  %v1626_v17 = vsub.f32 %v4681_v9, %v1568_v52  ;;  %1735 = vadd.xlane.f32.xlu1 %v1734_v11 }
 0x373   : > { %v1571_v18 = vpop.xlane.xlu0 %1570  ;;  %v1737_v19 = vsel %vm753_vm1, %v4807_v10, 0.0 }
 0x374   : > { %v4812_v23 = vpop.eup %3981  ;;  %3991 = vpow2.f32 %v1670_v7  ;;  %v1676_v54 = vmul.f32 1.442695, %v1626_v17  ;;  %v1627_v30 = vsub.f32 %v4687_v12, %v1571_v18  ;;  %1738 = vadd.xlane.f32.xlu0 %v1737_v19 }
 0x375   : > { %v1550_v20 = vpop.xlane.xlu1 %1549  ;;  %v1716_v34 = vsel %vm753_vm1, %v4812_v23, 0.0 }
 0x376   : > { %v4817_v56 = vpop.eup %3983  ;;  %3993 = vpow2.f32 %v1676_v54  ;;  %v1678_v9 = vmul.f32 1.442695, %v1627_v30  ;;  %v1620_v37 = vsub.f32 %v4671_v48, %v1550_v20  ;;  %1717 = vadd.xlane.f32.xlu1 %v1716_v34 }
 0x377   : > { %v1553_v60 = vpop.xlane.xlu0 %1552  ;;  %v1719_v45 = vsel %vm753_vm1, %v4817_v56, 0.0 }
 0x378   : > { %v4822_v28 = vpop.eup %3985  ;;  %3995 = vpow2.f32 %v1678_v9  ;;  %v1664_v12 = vmul.f32 1.442695, %v1620_v37  ;;  %v1621_v62 = vsub.f32 %v4677_v8, %v1553_v60  ;;  %1720 = vadd.xlane.f32.xlu0 %v1719_v45 }
 0x379   : > { %v1562_v31 = vpop.xlane.xlu1 %1561  ;;  %v1728_v0 = vsel %vm753_vm1, %v4822_v28, 0.0 }
 0x37a   : > { %v4827_v24 = vpop.eup %3987  ;;  %3997 = vpow2.f32 %v1664_v12  ;;  %v1666_v48 = vmul.f32 1.442695, %v1621_v62  ;;  %v1624_v41 = vsub.f32 %v4683_v14, %v1562_v31  ;;  %1729 = vadd.xlane.f32.xlu1 %v1728_v0 }
 0x37b   : > { %v1565_v58 = vpop.xlane.xlu0 %1564  ;;  %v1731_v57 = vsel %vm753_vm1, %v4827_v24, 0.0 }
 0x37c   : > { %v4832_v3 = vpop.eup %3989  ;;  %3999 = vpow2.f32 %v1666_v48  ;;  %v1672_v8 = vmul.f32 1.442695, %v1624_v41  ;;  %v1625_v4 = vsub.f32 %v4689_v13, %v1565_v58  ;;  %1732 = vadd.xlane.f32.xlu0 %v1731_v57 }
 0x37d   : > { %v1580_v63 = vpop.xlane.xlu1 %1579  ;;  %v1746_v6 = vsel %vm753_vm1, %v4832_v3, 0.0 }
 0x37e   : > { %v4837_v1 = vpop.eup %3991  ;;  %4001 = vpow2.f32 %v1672_v8  ;;  %v1674_v14 = vmul.f32 1.442695, %v1625_v4  ;;  %v1630_v52 = vsub.f32 %v4701_v35, %v1580_v63  ;;  %1747 = vadd.xlane.f32.xlu1 %v1746_v6 }
 0x37f   : > { %v1583_v11 = vpop.xlane.xlu0 %1582  ;;  %v1749_v7 = vsel %vm753_vm1, %v4837_v1, 0.0 }
 0x380   : > { %v4842_v17 = vpop.eup %3993  ;;  %4003 = vpow2.f32 %v1674_v14  ;;  %v1684_v13 = vmul.f32 1.442695, %v1630_v52  ;;  %v1631_v18 = vsub.f32 %v4707_v53, %v1583_v11  ;;  %1750 = vadd.xlane.f32.xlu0 %v1749_v7 }
 0x381   : > { %v1592_v19 = vpop.xlane.xlu1 %1591  ;;  %v1758_v54 = vsel %vm753_vm1, %v4842_v17, 0.0 }
 0x382   : > { %v4847_v30 = vpop.eup %3995  ;;  %4005 = vpow2.f32 %v1684_v13  ;;  %v1686_v35 = vmul.f32 1.442695, %v1631_v18  ;;  %v1634_v20 = vsub.f32 %v4713_v36, %v1592_v19  ;;  %1759 = vadd.xlane.f32.xlu1 %v1758_v54 }
 0x383   : > { %v1595_v34 = vpop.xlane.xlu0 %1594  ;;  %v1761_v9 = vsel %vm753_vm1, %v4847_v30, 0.0 }
 0x384   : > { %v4852_v37 = vpop.eup %3997  ;;  %4007 = vpow2.f32 %v1686_v35  ;;  %v1692_v53 = vmul.f32 1.442695, %v1634_v20  ;;  %v1635_v60 = vsub.f32 %v4719_v15, %v1595_v34  ;;  %1762 = vadd.xlane.f32.xlu0 %v1761_v9 }
 0x385   : > { %v1574_v45 = vpop.xlane.xlu1 %1573  ;;  %v1740_v12 = vsel %vm753_vm1, %v4852_v37, 0.0 }
 0x386   : > { %v4857_v62 = vpop.eup %3999  ;;  %4009 = vpow2.f32 %v1692_v53  ;;  %v1694_v36 = vmul.f32 1.442695, %v1635_v60  ;;  %v1628_v31 = vsub.f32 %v4703_v44, %v1574_v45  ;;  %1741 = vadd.xlane.f32.xlu1 %v1740_v12 }
 0x387   : > { %v1577_v0 = vpop.xlane.xlu0 %1576  ;;  %v1743_v48 = vsel %vm753_vm1, %v4857_v62, 0.0 }
 0x388   : > { %v4862_v41 = vpop.eup %4001  ;;  %4011 = vpow2.f32 %v1694_v36  ;;  %v1680_v15 = vmul.f32 1.442695, %v1628_v31  ;;  %v1629_v58 = vsub.f32 %v4709_v38, %v1577_v0  ;;  %1744 = vadd.xlane.f32.xlu0 %v1743_v48 }
 0x389   : > { %v1586_v57 = vpop.xlane.xlu1 %1585  ;;  %v1752_v8 = vsel %vm753_vm1, %v4862_v41, 0.0 }
 0x38a   : > { %v4867_v4 = vpop.eup %4003  ;;  %4013 = vpow2.f32 %v1680_v15  ;;  %v1682_v44 = vmul.f32 1.442695, %v1629_v58  ;;  %v1632_v63 = vsub.f32 %v4715_v40, %v1586_v57  ;;  %1753 = vadd.xlane.f32.xlu1 %v1752_v8 }
 0x38b   : > { %v1589_v6 = vpop.xlane.xlu0 %1588  ;;  %v1755_v14 = vsel %vm753_vm1, %v4867_v4, 0.0 }
 0x38c   : > { %v4872_v52 = vpop.eup %4005  ;;  %4015 = vpow2.f32 %v1682_v44  ;;  %v1688_v38 = vmul.f32 1.442695, %v1632_v63  ;;  %v1633_v11 = vsub.f32 %v4721_v16, %v1589_v6  ;;  %1756 = vadd.xlane.f32.xlu0 %v1755_v14 }
 0x38d   : > { %v1770_v7 = vsel %vm753_vm1, %v4872_v52, 0.0 }
 0x38e   : > { %v4877_v13 = vpop.eup %4007  ;;  %4017 = vpow2.f32 %v1688_v38  ;;  %v1690_v18 = vmul.f32 1.442695, %v1633_v11  ;;  %1771 = vadd.xlane.f32.xlu1 %v1770_v7 }
 0x38f   : > { %v1773_v40 = vsel %vm753_vm1, %v4877_v13, 0.0 }
 0x390   : > { %v4881_v19 = vpop.eup %4009  ;;  %4019 = vpow2.f32 %v1690_v18  ;;  %1774 = vadd.xlane.f32.xlu0 %v1773_v40 }
 0x391   : > { %v1782_v54 = vsel %vm753_vm1, %v4881_v19, 0.0 }
 0x392   : > { %v4885_v16 = vpop.eup %4011  ;;  %1783 = vadd.xlane.f32.xlu1 %v1782_v54 }
 0x393   : > { %v1785_v35 = vsel %vm753_vm1, %v4885_v16, 0.0 }
 0x394   : > { %v4889_v20 = vpop.eup %4013  ;;  %1786 = vadd.xlane.f32.xlu0 %v1785_v35 }
 0x395   : > { %v1764_v34 = vsel %vm753_vm1, %v4889_v20, 0.0 }
 0x396   : > { %v4893_v9 = vpop.eup %4015  ;;  %1765 = vadd.xlane.f32.xlu1 %v1764_v34 }
 0x397   : > { %v1767_v53 = vsel %vm753_vm1, %v4893_v9, 0.0 }
 0x398   : > { %v4897_v60 = vpop.eup %4017  ;;  %1768 = vadd.xlane.f32.xlu0 %v1767_v53 }
 0x399   : > { %v1776_v45 = vsel %vm753_vm1, %v4897_v60, 0.0 }
 0x39a   : > { %v4901_v12 = vpop.eup %4019  ;;  %1777 = vadd.xlane.f32.xlu1 %v1776_v45 }
 0x39b   : > { %v1779_v36 = vsel %vm753_vm1, %v4901_v12, 0.0 }
 0x39c   : > { %1780 = vadd.xlane.f32.xlu0 %v1779_v36 }
 0x3b2   : > { %v1712_v31 = vpop.xlane.xlu1 %1711 }
 0x3b3   : > { %4021 = vrcp.f32 %v1712_v31 }
 0x3b6   : > { %v1706_v0 = vpop.xlane.xlu1 %1705 }
 0x3ba   : > { %v1604_v48 = vpop.xlane.xlu1 %1603  ;;  %v1715_v15 = vpop.xlane.xlu0 %1714 }
 0x3bb   : > { %v1638_v58 = vsub.f32 %v4733_v43, %v1604_v48  ;;  %4023 = vrcp.f32 %v1715_v15 }
 0x3bc   : > { %4025 = vrcp.f32 %v1706_v0 }
 0x3bd   : > { %v1700_v57 = vmul.f32 1.442695, %v1638_v58  ;;  %v4022_v7 = vpop.eup %4021 }
 0x3be   : > { %v1598_v8 = vpop.xlane.xlu1 %1597  ;;  %v1709_v44 = vpop.xlane.xlu0 %1708  ;;  %v1834_v31 = vmul.f32 %v4022_v7, %v4757_v49 }
 0x3bf   : > { %4027 = vpow2.f32 %v1700_v57  ;;  %v1636_v63 = vsub.f32 %v4735_v32, %v1598_v8 }
 0x3c0   : > { %4029 = vrcp.f32 %v1709_v44 }
 0x3c1   : > { %v1696_v6 = vmul.f32 1.442695, %v1636_v63 }
 0x3c2   : > { %v1607_v14 = vpop.xlane.xlu0 %1606 }
 0x3c3   : > { %4031 = vpow2.f32 %v1696_v6  ;;  %v1639_v38 = vsub.f32 %v4737_v27, %v1607_v14 }
 0x3c5   : > { %v1702_v11 = vmul.f32 1.442695, %v1639_v38  ;;  %v4024_v40 = vpop.eup %4023 }
 0x3c6   : > { %v1601_v18 = vpop.xlane.xlu0 %1600  ;;  %v4026_v54 = vpop.eup %4025  ;;  %v1835_v32 = vmul.f32 %v4024_v40, %v4765_v46 }
 0x3c7   : > { %4033 = vpow2.f32 %v1702_v11  ;;  %v1637_v43 = vsub.f32 %v4739_v47, %v1601_v18  ;;  %v1832_v27 = vmul.f32 %v4026_v54, %v4761_v39 }
 0x3c8   : > { %v1865_v15 = vpack.c.bf16 %v1835_v32, %v1834_v31 }
 0x3c9   : > { %v4909_v35 = vpop.eup %4027  ;;  %v1698_v34 = vmul.f32 1.442695, %v1637_v43 }
 0x3ca   : > { %v4030_v53 = vpop.eup %4029  ;;  %v1794_v45 = vsel %vm753_vm1, %v4909_v35, 0.0  ;;  %v4941_v58 = vpop.permute.xlu0 %2246 }
 0x3cb   : > { %4035 = vpow2.f32 %v1698_v34  ;;  %1795 = vadd.xlane.f32.xlu1 %v1794_v45  ;;  %v1833_v36 = vmul.f32 %v4030_v53, %v4771_v21 }
 0x3cd   : > { %v4917_v0 = vpop.eup %4031  ;;  %v1864_v47 = vpack.c.bf16 %v1833_v36, %v1832_v27 }
 0x3ce   : > { %v1788_v48 = vsel %vm753_vm1, %v4917_v0, 0.0 }
 0x3cf   : > { %3718 = vmatprep.mubr.msk.bf16.mxu1 %vm753_vm1, %v1864_v47  ;;  %1789 = vadd.xlane.f32.xlu1 %v1788_v48 }
 0x3d0   : > { %3719 = vmatmul.mubr.msk.bf16.vlgmr.msra.gmra.mrb[16].mxu1 %vm753_vm1, %v1865_v15 }
 0x3d1   : > { %v4923_v46 = vpop.eup %4033  ;;  %3731 = vmatpush3.bf16.msra.mxu1 %v4612_v25  ;;  %v4939_v25 = vpop.permute.xlu1 %2307 }
 0x3d2   : > { %3732 = vmatprep.subr.bf16.mxu1 %v4741_v50  ;;  %v1797_v49 = vsel %vm753_vm1, %v4923_v46, 0.0 }
 0x3d3   : > { %1798 = vadd.xlane.f32.xlu0 %v1797_v49 }
 0x3d5   : > { %v4929_v39 = vpop.eup %4035  ;;  %3733 = vmatpush3.bf16.msra.mxu1 %v4741_v50 }
 0x3d6   : > { %3746 = vmatprep.subr.bf16.mxu1 %v4745_v59  ;;  %v1791_v21 = vsel %vm753_vm1, %v4929_v39, 0.0 }
 0x3d7   : > { %1792 = vadd.xlane.f32.xlu0 %v1791_v21 }
 0x3e0   : > { %2309 = vrot.lane.b32.xlu1 %v4520_v29, %s4191_s16 }
 0x3ed   : > { %2248 = vrot.lane.b32.xlu0 %v4510_v26, %s4191_s16  ;;  %s5370_s16 = scalar_lea.vmem %s5340_s6, %s4304_s23 }
 0x3fb   : > { %v1724_v57 = vpop.xlane.xlu1 %1723 }
 0x3fd   : > { %v1727_v8 = vpop.xlane.xlu0 %1726 }
 0x3fe   : > { %4037 = vrcp.f32 %v1727_v8 }
 0x3ff   : > { %v1736_v44 = vpop.xlane.xlu1 %1735 }
 0x401   : > { %v1739_v50 = vpop.xlane.xlu0 %1738 }
 0x403   : > { %v1718_v63 = vpop.xlane.xlu1 %1717 }
 0x404   : > { %4039 = vrcp.f32 %v1718_v63 }
 0x405   : > { %4041 = vrcp.f32 %v1724_v57  ;;  %v1721_v6 = vpop.xlane.xlu0 %1720 }
 0x406   : > { %4043 = vrcp.f32 %v1721_v6 }
 0x407   : > { %4045 = vrcp.f32 %v1739_v50  ;;  %v1730_v14 = vpop.xlane.xlu1 %1729 }
 0x408   : > { %4047 = vrcp.f32 %v1730_v14  ;;  %v4038_v38 = vpop.eup %4037 }
 0x409   : > { %4049 = vrcp.f32 %v1736_v44  ;;  %v1733_v29 = vpop.xlane.xlu0 %1732  ;;  %v1839_v54 = vmul.f32 %v4038_v38, %v4797_v42 }
 0x40a   : > { %4051 = vrcp.f32 %v1733_v29 }
 0x40b   : > { %v1748_v26 = vpop.xlane.xlu1 %1747 }
 0x40d   : > { %v1751_v11 = vpop.xlane.xlu0 %1750 }
 0x40e   : > { %v4040_v7 = vpop.eup %4039  ;;  %4053 = vrcp.f32 %v1751_v11 }
 0x40f   : > { %v4042_v18 = vpop.eup %4041  ;;  %v1760_v40 = vpop.xlane.xlu1 %1759  ;;  %v1836_v32 = vmul.f32 %v4040_v7, %v4812_v23 }
 0x410   : > { %v4044_v43 = vpop.eup %4043  ;;  %v1838_v36 = vmul.f32 %v4042_v18, %v4792_v22 }
 0x411   : > { %v4046_v34 = vpop.eup %4045  ;;  %v1763_v53 = vpop.xlane.xlu0 %1762  ;;  %v1837_v45 = vmul.f32 %v4044_v43, %v4817_v56 }
 0x412   : > { %v4048_v27 = vpop.eup %4047  ;;  %v1843_v49 = vmul.f32 %v4046_v34, %v4807_v10  ;;  %v1867_v21 = vpack.c.bf16 %v1839_v54, %v1838_v36 }
 0x413   : > { %v4050_v31 = vpop.eup %4049  ;;  %v1742_v47 = vpop.xlane.xlu1 %1741  ;;  %v1866_v48 = vpack.c.bf16 %v1837_v45, %v1836_v32  ;;  %v1840_v23 = vmul.f32 %v4048_v27, %v4822_v28 }
 0x414   : > { %v4052_v15 = vpop.eup %4051  ;;  %4055 = vrcp.f32 %v1742_v47  ;;  %v1842_v57 = vmul.f32 %v4050_v31, %v4802_v5 }
 0x415   : > { %4057 = vrcp.f32 %v1748_v26  ;;  %3726 = vmatprep.mubr.msk.bf16.mxu0 %vm753_vm1, %v1866_v48  ;;  %v1745_v42 = vpop.xlane.xlu0 %1744  ;;  %v1841_v56 = vmul.f32 %v4052_v15, %v4827_v24 }
 0x416   : > { %4059 = vrcp.f32 %v1745_v42  ;;  %3727 = vmatmul.mubr.msk.bf16.vlgmr.msra.gmra.mrb[24].mxu0 %vm753_vm1, %v1867_v21  ;;  %v1869_v8 = vpack.c.bf16 %v1843_v49, %v1842_v57 }
 0x417   : > { %4061 = vrcp.f32 %v1763_v53  ;;  %3739 = vmatpush3.bf16.msra.mxu0 %v4618_v33  ;;  %v1754_v22 = vpop.xlane.xlu1 %1753  ;;  %v1868_v10 = vpack.c.bf16 %v1841_v56, %v1840_v23 }
 0x418   : > { %4063 = vrcp.f32 %v1754_v22  ;;  %3740 = vmatprep.subr.bf16.mxu0 %v4743_v51  ;;  %v4054_v33 = vpop.eup %4053 }
 0x419   : > { %4065 = vrcp.f32 %v1760_v40  ;;  %3734 = vmatprep.mubr.msk.bf16.mxu1 %vm753_vm1, %v1868_v10  ;;  %v1757_v28 = vpop.xlane.xlu0 %1756  ;;  %v1847_v14 = vmul.f32 %v4054_v33, %v4837_v1 }
 0x41a   : > { %4067 = vrcp.f32 %v1757_v28  ;;  %3735 = vmatmul.mubr.msk.bf16.vlgmr.msra.gmra.mrb[20].mxu1 %vm753_vm1, %v1869_v8 }
 0x41b   : > { %3741 = vmatpush3.bf16.msra.mxu0 %v4743_v51  ;;  %3747 = vmatpush3.bf16.msra.mxu1 %v4745_v59  ;;  %v1772_v5 = vpop.xlane.xlu1 %1771 }
 0x41c   : > { %3748 = vmatprep.subr.bf16.mxu1 %v4749_v55  ;;  %3754 = vmatprep.subr.bf16.mxu0 %v4751_v2 }
 0x41d   : > { %v1775_v24 = vpop.xlane.xlu0 %1774 }
 0x41e   : > { %v4056_v44 = vpop.eup %4055  ;;  %4069 = vrcp.f32 %v1775_v24 }
 0x41f   : > { %v4058_v50 = vpop.eup %4057  ;;  %3749 = vmatpush3.bf16.msra.mxu1 %v4749_v55  ;;  %v1784_v63 = vpop.xlane.xlu1 %1783  ;;  %v1844_v59 = vmul.f32 %v4056_v44, %v4852_v37 }
 0x420   : > { %v4060_v6 = vpop.eup %4059  ;;  %3762 = vmatprep.subr.bf16.mxu1 %v4941_v58  ;;  %v1846_v11 = vmul.f32 %v4058_v50, %v4832_v3 }
 0x421   : > { %v4062_v51 = vpop.eup %4061  ;;  %v1787_v29 = vpop.xlane.xlu0 %1786  ;;  %v1845_v26 = vmul.f32 %v4060_v6, %v4857_v62 }
 0x422   : > { %v4064_v38 = vpop.eup %4063  ;;  %v1851_v43 = vmul.f32 %v4062_v51, %v4847_v30  ;;  %v1871_v1 = vpack.c.bf16 %v1847_v14, %v1846_v11 }
 0x423   : > { %v4066_v7 = vpop.eup %4065  ;;  %v1766_v18 = vpop.xlane.xlu1 %1765  ;;  %v1870_v40 = vpack.c.bf16 %v1845_v26, %v1844_v59  ;;  %v1848_v37 = vmul.f32 %v4064_v38, %v4862_v41 }
 0x424   : > { %v4068_v55 = vpop.eup %4067  ;;  %4071 = vrcp.f32 %v1766_v18  ;;  %v1850_v34 = vmul.f32 %v4066_v7, %v4842_v17  ;;  %v3957_v18 = vld [vmem:[%s5367_s17] sm:$0xff]  }
 0x425   : > { %4073 = vrcp.f32 %v1772_v5  ;;  %3742 = vmatprep.mubr.msk.bf16.mxu0 %vm753_vm1, %v1870_v40  ;;  %v1769_v54 = vpop.xlane.xlu0 %1768  ;;  %v1849_v62 = vmul.f32 %v4068_v55, %v4867_v4  ;;  %v3958_v55 = vld [vmem:[%s5367_s17 + $0x8] sm:$0xff]   ;;  %s5372_s17 = sld [smem:[#allocation13_spill]] (!%p3532_p6) }
 0x426   : > { %4075 = vrcp.f32 %v1769_v54  ;;  %3743 = vmatmul.mubr.msk.bf16.vlgmr.msra.gmra.mrb[28].mxu0 %vm753_vm1, %v1871_v1  ;;  %v1873_v30 = vpack.c.bf16 %v1851_v43, %v1850_v34 }
 0x427   : > { %3755 = vmatpush3.bf16.msra.mxu0 %v4751_v2  ;;  %v1778_v3 = vpop.xlane.xlu1 %1777  ;;  %v1872_v53 = vpack.c.bf16 %v1849_v62, %v1848_v37 }
 0x428   : > { %4077 = vrcp.f32 %v1778_v3  ;;  %3756 = vmatprep.subr.bf16.mxu0 %v4747_v61  ;;  %v4070_v17 = vpop.eup %4069 }
 0x429   : > { %3750 = vmatprep.mubr.msk.bf16.mxu1 %vm753_vm1, %v1872_v53  ;;  %v1781_v32 = vpop.xlane.xlu0 %1780  ;;  %v1855_v45 = vmul.f32 %v4070_v17, %v4877_v13 }
 0x42a   : > { %4079 = vrcp.f32 %v1781_v32  ;;  %3751 = vmatmul.mubr.msk.bf16.vlgmr.msra.gmra.mrb[24].mxu1 %vm753_vm1, %v1873_v30 }
 0x42b   : > { %3757 = vmatpush3.bf16.msra.mxu0 %v4747_v61  ;;  %3763 = vmatpush3.bf16.msra.mxu1 %v4941_v58  ;;  %4081 = vrcp.f32 %v1787_v29 }
 0x42c   : > { %3770 = vmatprep.subr.bf16.mxu0 %v4939_v25  ;;  %4083 = vrcp.f32 %v1784_v63 }
 0x42e   : > { %v4072_v2 = vpop.eup %4071 }
 0x42f   : > { %v4074_v41 = vpop.eup %4073  ;;  %v1852_v27 = vmul.f32 %v4072_v2, %v4889_v20 }
 0x430   : > { %v4076_v4 = vpop.eup %4075  ;;  %v1854_v47 = vmul.f32 %v4074_v41, %v4872_v52 }
 0x431   : > { %v1853_v36 = vmul.f32 %v4076_v4, %v4893_v9 }
 0x432   : > { %v4078_v31 = vpop.eup %4077  ;;  %v1875_v61 = vpack.c.bf16 %v1855_v45, %v1854_v47 }
 0x433   : > { %v1874_v48 = vpack.c.bf16 %v1853_v36, %v1852_v27  ;;  %v1856_v58 = vmul.f32 %v4078_v31, %v4897_v60 }
 0x434   : > { %v4080_v15 = vpop.eup %4079 }
 0x435   : > { %3758 = vmatprep.mubr.msk.bf16.mxu0 %vm753_vm1, %v1874_v48  ;;  %v1857_v49 = vmul.f32 %v4080_v15, %v4901_v12  ;;  %v4082_v60 = vpop.eup %4081 }
 0x436   : > { %3759 = vmatmul.mubr.msk.bf16.vlgmr.msra.gmra.mrb[32].mxu0 %vm753_vm1, %v1875_v61  ;;  %v4084_v42 = vpop.eup %4083 }
 0x437   : > { %3771 = vmatpush3.bf16.msra.mxu0 %v4939_v25  ;;  %v1876_v13 = vpack.c.bf16 %v1857_v49, %v1856_v58  ;;  %v1859_v25 = vmul.f32 %v4082_v60, %v4885_v16  ;;  %v1858_v56 = vmul.f32 %v4084_v42, %v4881_v19 }
 0x439   : > { %3766 = vmatprep.mubr.msk.bf16.mxu1 %vm753_vm1, %v1876_v13  ;;  %v1877_v57 = vpack.c.bf16 %v1859_v25, %v1858_v56 }
 0x458   : > { %v1796_v20 = vpop.xlane.xlu1 %1795 }
 0x45c   : > { %v1790_v52 = vpop.xlane.xlu1 %1789 }
 0x460   : > { %v2310_v9 = vpop.permute.xlu1 %2309  ;;  %v1799_v21 = vpop.xlane.xlu0 %1798 }
 0x461   : > { %3772 = vmatprep.subr.bf16.mxu0 %v2310_v9  ;;  %4085 = vrcp.f32 %v1799_v21 }
 0x462   : > { %3773 = vmatpush3.bf16.msra.mxu0 %v2310_v9  ;;  %4087 = vrcp.f32 %v1790_v52 }
 0x463   : > { %4089 = vrcp.f32 %v1796_v20 }
 0x464   : > { %v1793_v12 = vpop.xlane.xlu0 %1792 }
 0x465   : > { %4091 = vrcp.f32 %v1793_v12 }
 0x468   : > { %v2249_v23 = vpop.permute.xlu0 %2248 }
 0x469   : > { %3764 = vmatprep.subr.bf16.mxu1 %v2249_v23 }
 0x46a   : > { %3765 = vmatpush3.bf16.msra.mxu1 %v2249_v23 }
 0x46b   : > { %v4086_v22 = vpop.eup %4085  ;;  %3778 = vmatprep.subr.bf16.mxu1 %v3957_v18 }
 0x46c   : > { %v4088_v10 = vpop.eup %4087  ;;  %v1863_v5 = vmul.f32 %v4086_v22, %v4923_v46 }
 0x46d   : > { %3767 = vmatmul.mubr.msk.bf16.vlgmr.msra.gmra.mrb[28].mxu1 %vm753_vm1, %v1877_v57  ;;  %v4090_v8 = vpop.eup %4089  ;;  %v1860_v33 = vmul.f32 %v4088_v10, %v4917_v0 }
 0x46e   : > { %v1862_v16 = vmul.f32 %v4090_v8, %v4909_v35  ;;  %3779 = vmatpush3.bf16.msra.mxu1 %v3957_v18 }
 0x46f   : > { %v4092_v28 = vpop.eup %4091  ;;  %3780 = vmatprep.subr.bf16.mxu1 %v3958_v55 }
 0x470   : > { %v1861_v24 = vmul.f32 %v4092_v28, %v4929_v39  ;;  %v1879_v50 = vpack.c.bf16 %v1863_v5, %v1862_v16 }
 0x472   : > { %v1878_v44 = vpack.c.bf16 %v1861_v24, %v1860_v33  ;;  %3781 = vmatpush3.bf16.msra.mxu1 %v3958_v55 }
 0x474   : > { %3774 = vmatprep.mubr.msk.bf16.mxu0 %vm753_vm1, %v1878_v44 }
 0x475   : > { %3775 = vmatmul.mubr.msk.bf16.vlgmr.msra.gmra.mrb[36].mxu0 %vm753_vm1, %v1879_v50 }
 0x4a3   : > { %v4999_v19 = vpop.f32.mrb[16].mxu1 }
 0x4a4   : > { %v5001_v63 = vpop.f32.mrb[17].mxu1 }
 0x4a5   : > { %v5003_v6 = vpop.f32.mrb[18].mxu1 }
 0x4a6   : > { %v5005_v46 = vpop.f32.mrb[19].mxu1 }
 0x4e9   : > { %v3728_v0 = vpop.f32.mrb[24].mxu0 }
 0x4ea   : > { %v1987_v14 = vpop.f32.mrb[25].mxu0 }
 0x4eb   : > { %v3729_v39 = vpop.f32.mrb[26].mxu0 }
 0x4ec   : > { %v3895_v51 = vpack.i.bf16 %v3729_v39, %v3728_v0  ;;  %v1990_v35 = vpop.f32.mrb[27].mxu0 }
 0x4ed   : > { %v3905_v29 = vpack.i.bf16 %v1990_v35, %v1987_v14  ;;  %v3736_v59 = vpop.f32.mrb[20].mxu1 }
 0x4ee   : > { %3896 = vrot.lane.b32.xlu1 %v3895_v51, %s4192_s21  ;;  %v2048_v26 = vpop.f32.mrb[21].mxu1 }
 0x4ef   : > { %3906 = vrot.lane.b32.xlu0 %v3905_v29, %s4192_s21  ;;  %v3737_v38 = vpop.f32.mrb[22].mxu1 }
 0x4f0   : > { %v3900_v11 = vpack.i.bf16 %v3737_v38, %v3736_v59  ;;  %v2051_v7 = vpop.f32.mrb[23].mxu1 }
 0x4f1   : > { %v3910_v40 = vpack.i.bf16 %v2051_v7, %v2048_v26 }
 0x4f2   : > { %3901 = vrot.lane.b32.xlu1 %v3900_v11, %s4193_s19 }
 0x4f3   : > { %3911 = vrot.lane.b32.xlu0 %v3910_v40, %s4193_s19 }
 0x4f9   : > { %v3744_v43 = vpop.f32.mrb[28].mxu0 }
 0x4fa   : > { %v2109_v1 = vpop.f32.mrb[29].mxu0 }
 0x4fb   : > { %v3745_v54 = vpop.f32.mrb[30].mxu0 }
 0x4fc   : > { %v3915_v37 = vpack.i.bf16 %v3745_v54, %v3744_v43  ;;  %v2112_v62 = vpop.f32.mrb[31].mxu0 }
 0x4fd   : > { %v3920_v34 = vpack.i.bf16 %v2112_v62, %v2109_v1  ;;  %v5013_v3 = vpop.f32.mrb[24].mxu1 }
 0x4fe   : > { %3916 = vrot.lane.b32.xlu1 %v3915_v37, %s4194_s22  ;;  %v5015_v53 = vpop.f32.mrb[25].mxu1 }
 0x4ff   : > { %3921 = vrot.lane.b32.xlu0 %v3920_v34, %s4194_s22  ;;  %v5017_v30 = vpop.f32.mrb[26].mxu1 }
 0x500   : > { %v5019_v32 = vpop.f32.mrb[27].mxu1 }
 0x509   : > { %v3760_v17 = vpop.f32.mrb[32].mxu0 }
 0x50a   : > { %v2231_v2 = vpop.f32.mrb[33].mxu0 }
 0x50b   : > { %v3761_v41 = vpop.f32.mrb[34].mxu0 }
 0x50c   : > { %v3925_v4 = vpack.i.bf16 %v3761_v41, %v3760_v17  ;;  %v2234_v45 = vpop.f32.mrb[35].mxu0 }
 0x50d   : > { %v3935_v27 = vpack.i.bf16 %v2234_v45, %v2231_v2 }
 0x50e   : > { %3926 = vrot.lane.b32.xlu1 %v3925_v4, %s4192_s21 }
 0x50f   : > { %3936 = vrot.lane.b32.xlu0 %v3935_v27, %s4192_s21 }
 0x540   : > { %v3768_v36 = vpop.f32.mrb[28].mxu1 }
 0x541   : > { %v2292_v31 = vpop.f32.mrb[29].mxu1 }
 0x542   : > { %v3769_v47 = vpop.f32.mrb[30].mxu1 }
 0x543   : > { %v3930_v48 = vpack.i.bf16 %v3769_v47, %v3768_v36  ;;  %v2295_v15 = vpop.f32.mrb[31].mxu1 }
 0x544   : > { %v3940_v61 = vpack.i.bf16 %v2295_v15, %v2292_v31 }
 0x545   : > { %3931 = vrot.lane.b32.xlu1 %v3930_v48, %s4193_s19 }
 0x546   : > { %3941 = vrot.lane.b32.xlu0 %v3940_v61, %s4193_s19 }
 0x548   : > { %v3776_v58 = vpop.f32.mrb[36].mxu0 }
 0x549   : > { %v2353_v49 = vpop.f32.mrb[37].mxu0 }
 0x54a   : > { %v3777_v13 = vpop.f32.mrb[38].mxu0 }
 0x54b   : > { %v3950_v20 = vpack.i.bf16 %v3777_v13, %v3776_v58  ;;  %v2356_v52 = vpop.f32.mrb[39].mxu0 }
 0x54c   : > { %v3945_v9 = vpack.i.bf16 %v2356_v52, %v2353_v49 }
 0x54d   : > { %3951 = vrot.lane.b32.xlu1 %v3950_v20, %s4194_s22 }
 0x54e   : > { %3946 = vrot.lane.b32.xlu0 %v3945_v9, %s4194_s22 }
 0x560   : > { %v3897_v21 = vpop.permute.xlu1 %3896 }
 0x561   : > { %v3907_v60 = vpop.permute.xlu0 %3906  ;;  %v3899_v42 = vunpack.i.h.bf16 %v3897_v21  ;;  %v3898_v25 = vunpack.i.l.bf16 %v3897_v21  ;;  %v3505_v21 = vld [vmem:[%s5368_s27] ss:$0 sm:$0xff] }
 0x562   : > { %v3909_v56 = vunpack.i.h.bf16 %v3907_v60  ;;  %v3908_v57 = vunpack.i.l.bf16 %v3907_v60 }
 0x563   : > { %v2467_v5 = vsel %vm981_vm2, %v5003_v6, %v3899_v42  ;;  %v2466_v33 = vsel %vm981_vm2, %v4999_v19, %v3898_v25 }
 0x564   : > { %v3902_v12 = vpop.permute.xlu1 %3901  ;;  %v2465_v16 = vsel %vm981_vm2, %v5005_v46, %v3909_v56  ;;  %v2464_v44 = vsel %vm981_vm2, %v5001_v63, %v3908_v57  ;;  %v4125_v57 = vld [vmem:[#allocation2] sm:$0xff] }
 0x565   : > { %v3912_v23 = vpop.permute.xlu0 %3911  ;;  %v3904_v22 = vunpack.i.h.bf16 %v3902_v12  ;;  %v3903_v10 = vunpack.i.l.bf16 %v3902_v12 }
 0x566   : > { %v3914_v8 = vunpack.i.h.bf16 %v3912_v23  ;;  %v3913_v28 = vunpack.i.l.bf16 %v3912_v23 }
 0x567   : > { %v2476_v39 = vsel %vm2472_vm3, %v2467_v5, %v3904_v22  ;;  %v2475_v51 = vsel %vm2472_vm3, %v2466_v33, %v3903_v10  ;;  %v4127_v33 = vld [vmem:[#allocation2 + $0x8] sm:$0xff] }
 0x568   : > { %v2473_v29 = vsel %vm2472_vm3, %v2464_v44, %v3913_v28  ;;  %v2474_v19 = vsel %vm2472_vm3, %v2465_v16, %v3914_v8  ;;  %v4126_v8 = vld [vmem:[#allocation2 + $0x10] sm:$0xff] }
 0x570   : > { %v3917_v24 = vpop.permute.xlu1 %3916 }
 0x571   : > { %v3919_v50 = vunpack.i.h.bf16 %v3917_v24  ;;  %v3918_v0 = vunpack.i.l.bf16 %v3917_v24  ;;  %v3922_v14 = vpop.permute.xlu0 %3921 }
 0x572   : > { %v3924_v35 = vunpack.i.h.bf16 %v3922_v14  ;;  %v3923_v6 = vunpack.i.l.bf16 %v3922_v14 }
 0x573   : > { %v2485_v59 = vsel %vm2481_vm4, %v2476_v39, %v3919_v50  ;;  %v2484_v46 = vsel %vm2481_vm4, %v2475_v51, %v3918_v0  ;;  %v4128_v50 = vld [vmem:[#allocation2 + $0x18] sm:$0xff] }
 0x574   : > { %v2491_v26 = vpack.c.bf16 %v2485_v59, %v2484_v46  ;;  %v2482_v63 = vsel %vm2481_vm4, %v2473_v29, %v3923_v6  ;;  %v2483_v38 = vsel %vm2481_vm4, %v2474_v19, %v3924_v35  ;;  %v4129_v46 = vld [vmem:[#allocation2 + $0x20] sm:$0xff] }
 0x575   : > { %v2490_v11 = vpack.c.bf16 %v2483_v38, %v2482_v63 }
 0x577   : > { %3782 = vmatprep.mubr.msk.bf16.mxu1 %vm753_vm1, %v2490_v11  ;;  %v4130_v11 = vld [vmem:[#allocation2 + $0x30] sm:$0xff] }
 0x578   : > { %3783 = vmatmul.mubr.msk.bf16.vlgmr.msra.gmra.mrb[32].mxu1 %vm753_vm1, %v2491_v26 }
 0x580   : > { %v3927_v7 = vpop.permute.xlu1 %3926 }
 0x581   : > { %v3937_v18 = vpop.permute.xlu0 %3936  ;;  %v3929_v55 = vunpack.i.h.bf16 %v3927_v7  ;;  %v3928_v43 = vunpack.i.l.bf16 %v3927_v7 }
 0x582   : > { %v3939_v54 = vunpack.i.h.bf16 %v3937_v18  ;;  %v3938_v37 = vunpack.i.l.bf16 %v3937_v18  ;;  %v4131_v18 = vld [vmem:[#allocation2 + $0x28] sm:$0xff] }
 0x583   : > { %v2471_v41 = vsel %vm981_vm2, %v5017_v30, %v3929_v55  ;;  %v2470_v4 = vsel %vm981_vm2, %v5013_v3, %v3928_v43  ;;  %v4132_v43 = vld [vmem:[#allocation2 + $0x38] sm:$0xff] }
 0x584   : > { %v2469_v27 = vsel %vm981_vm2, %v5019_v32, %v3939_v54  ;;  %v2468_v36 = vsel %vm981_vm2, %v5015_v53, %v3938_v37 }
 0x5b7   : > { %v3932_v40 = vpop.permute.xlu1 %3931 }
 0x5b8   : > { %v3942_v1 = vpop.permute.xlu0 %3941  ;;  %v3934_v62 = vunpack.i.h.bf16 %v3932_v40  ;;  %v3933_v34 = vunpack.i.l.bf16 %v3932_v40 }
 0x5b9   : > { %v3944_v17 = vunpack.i.h.bf16 %v3942_v1  ;;  %v3943_v2 = vunpack.i.l.bf16 %v3942_v1 }
 0x5ba   : > { %v2480_v15 = vsel %vm2472_vm3, %v2471_v41, %v3934_v62  ;;  %v2479_v61 = vsel %vm2472_vm3, %v2470_v4, %v3933_v34 }
 0x5bb   : > { %v2477_v49 = vsel %vm2472_vm3, %v2468_v36, %v3943_v2  ;;  %v2478_v3 = vsel %vm2472_vm3, %v2469_v27, %v3944_v17 }
 0x5bf   : > { %v3952_v45 = vpop.permute.xlu1 %3951 }
 0x5c0   : > { %v3954_v31 = vunpack.i.h.bf16 %v3952_v45  ;;  %v3953_v47 = vunpack.i.l.bf16 %v3952_v45  ;;  %v3947_v48 = vpop.permute.xlu0 %3946 }
 0x5c1   : > { %v3949_v58 = vunpack.i.h.bf16 %v3947_v48  ;;  %v3948_v30 = vunpack.i.l.bf16 %v3947_v48 }
 0x5c2   : > { %v2488_v13 = vsel %vm2481_vm4, %v2479_v61, %v3953_v47  ;;  %v2489_v32 = vsel %vm2481_vm4, %v2480_v15, %v3954_v31 }
 0x5c3   : > { %v2493_v20 = vpack.c.bf16 %v2489_v32, %v2488_v13  ;;  %v2486_v53 = vsel %vm2481_vm4, %v2477_v49, %v3948_v30  ;;  %v2487_v52 = vsel %vm2481_vm4, %v2478_v3, %v3949_v58 }
 0x5c4   : > { %v2492_v9 = vpack.c.bf16 %v2487_v52, %v2486_v53  ;;  %v3959_v53 = vld [vmem:[%s4336_s1] sm:$0xff]   ;;  %v3960_v52 = vld [vmem:[%s4336_s1 + $0x8] sm:$0xff]  }
 0x5c5   : > { %3790 = vmatprep.subr.bf16.mxu0 %v3959_v53 }
 0x5c6   : > { %3786 = vmatprep.mubr.msk.bf16.mxu1 %vm753_vm1, %v2492_v9  ;;  %3791 = vmatpush3.bf16.msra.mxu0 %v3959_v53 }
 0x5c7   : > { %3787 = vmatmul.mubr.msk.bf16.gmra.mrb[36].mxu1 %vm753_vm1, %v2493_v20  ;;  %3792 = vmatprep.subr.bf16.mxu0 %v3960_v52 }
 0x5ca   : > { %3793 = vmatpush3.bf16.msra.mxu0 %v3960_v52 }
 0x64b   : > { %v3784_v60 = vpop.f32.mrb[32].mxu1 }
 0x64c   : > { %v2563_v12 = vpop.f32.mrb[33].mxu1  ;;  %v2572_v42 = vadd.f32 %v3784_v60, %v3505_v21 }
 0x64d   : > { %v2564_v25 = vadd.f32 %v3505_v21, %v2563_v12  ;;  %v3785_v23 = vpop.f32.mrb[34].mxu1 }
 0x64e   : > { %v2566_v56 = vpop.f32.mrb[35].mxu1  ;;  %v2596_v28 = vadd.f32 %v4126_v8, %v2572_v42  ;;  %v2575_v5 = vadd.f32 %v3785_v23, %v3505_v21 }
 0x64f   : > { %v2594_v22 = vadd.f32 %v4125_v57, %v2564_v25  ;;  %v2567_v10 = vadd.f32 %v3505_v21, %v2566_v56 }
 0x650   : > { %v2597_v0 = vadd.f32 %v4128_v50, %v2575_v5  ;;  %v2610_v14 = vsel %vm753_vm1, %v2596_v28, 0.0 }
 0x651   : > { %v2595_v24 = vadd.f32 %v4127_v33, %v2567_v10  ;;  %v2604_v16 = vsel %vm753_vm1, %v2594_v22, 0.0 }
 0x652   : > { %2605 = vadd.xlane.f32.xlu0 %v2604_v16  ;;  %v2613_v39 = vsel %vm753_vm1, %v2597_v0, 0.0 }
 0x653   : > { %v2607_v44 = vsel %vm753_vm1, %v2595_v24, 0.0 }
 0x654   : > { %2608 = vadd.xlane.f32.xlu1 %v2607_v44 }
 0x656   : > { %2611 = vadd.xlane.f32.xlu0 %v2610_v14  ;;  %v3961_v14 = vld [vmem:[%s4346_s15] sm:$0xff]  }
 0x657   : > { %3802 = vmatprep.subr.bf16.mxu1 %v3961_v14 }
 0x658   : > { %3803 = vmatpush3.bf16.msra.mxu1 %v3961_v14 }
 0x65a   : > { %2614 = vadd.xlane.f32.xlu0 %v2613_v39  ;;  %v3962_v39 = vld [vmem:[%s4346_s15 + $0x8] sm:$0xff]  }
 0x65b   : > { %3804 = vmatprep.subr.bf16.mxu1 %v3962_v39 }
 0x65c   : > { %3805 = vmatpush3.bf16.msra.mxu1 %v3962_v39  ;;  %v3964_v39 = vld [vmem:[%s4346_s15 + $0x18] sm:$0xff]  }
 0x69a   : > { %v3788_v51 = vpop.f32.mrb[36].mxu1 }
 0x69b   : > { %v2579_v35 = vpop.f32.mrb[37].mxu1  ;;  %v2588_v6 = vadd.f32 %v3788_v51, %v3505_v21 }
 0x69c   : > { %v2580_v29 = vadd.f32 %v3505_v21, %v2579_v35  ;;  %v3789_v19 = vpop.f32.mrb[38].mxu1 }
 0x69d   : > { %v2582_v59 = vpop.f32.mrb[39].mxu1  ;;  %v2591_v63 = vadd.f32 %v3789_v19, %v3505_v21  ;;  %v2600_v7 = vadd.f32 %v4130_v11, %v2588_v6 }
 0x69e   : > { %v2598_v26 = vadd.f32 %v4129_v46, %v2580_v29  ;;  %v2583_v38 = vadd.f32 %v3505_v21, %v2582_v59 }
 0x69f   : > { %v2601_v1 = vadd.f32 %v4132_v43, %v2591_v63  ;;  %v2622_v37 = vsel %vm753_vm1, %v2600_v7, 0.0 }
 0x6a0   : > { %v2599_v40 = vadd.f32 %v4131_v18, %v2583_v38  ;;  %v2616_v55 = vsel %vm753_vm1, %v2598_v26, 0.0 }
 0x6a1   : > { %2617 = vadd.xlane.f32.xlu1 %v2616_v55  ;;  %v2625_v62 = vsel %vm753_vm1, %v2601_v1, 0.0 }
 0x6a2   : > { %v2619_v54 = vsel %vm753_vm1, %v2599_v40, 0.0 }
 0x6a3   : > { %2620 = vadd.xlane.f32.xlu0 %v2619_v54 }
 0x6a5   : > { %2623 = vadd.xlane.f32.xlu1 %v2622_v37 }
 0x6a7   : > { %2626 = vadd.xlane.f32.xlu0 %v2625_v62  ;;  %v3513_v62 = vld [vmem:[%s5370_s16] ss:$0 sm:$0xff] }
 0x6df   : > { %v2606_v34 = vpop.xlane.xlu0 %2605 }
 0x6e0   : > { %v2629_v17 = vmul.f32 0.03125, %v2606_v34 }
 0x6e1   : > { %v2609_v2 = vpop.xlane.xlu1 %2608 }
 0x6e2   : > { %v5074_v41 = vsub.f32 %v2594_v22, %v2629_v17  ;;  %v2630_v4 = vmul.f32 0.03125, %v2609_v2 }
 0x6e3   : > { %v2612_v45 = vpop.xlane.xlu0 %2611 }
 0x6e4   : > { %v5076_v27 = vsub.f32 %v2595_v24, %v2630_v4  ;;  %v2631_v36 = vmul.f32 0.03125, %v2612_v45  ;;  %v2645_v31 = vmul.f32 %v5074_v41, %v5074_v41 }
 0x6e6   : > { %v5080_v47 = vsub.f32 %v2596_v28, %v2631_v36  ;;  %v2653_v48 = vsel %vm753_vm1, %v2645_v31, 0.0  ;;  %v2646_v15 = vmul.f32 %v5076_v27, %v5076_v27 }
 0x6e7   : > { %2654 = vadd.xlane.f32.xlu1 %v2653_v48  ;;  %v2615_v61 = vpop.xlane.xlu0 %2614 }
 0x6e8   : > { %v2632_v58 = vmul.f32 0.03125, %v2615_v61  ;;  %v2656_v30 = vsel %vm753_vm1, %v2646_v15, 0.0  ;;  %v2647_v49 = vmul.f32 %v5080_v47, %v5080_v47 }
 0x6e9   : > { %2657 = vadd.xlane.f32.xlu0 %v2656_v30 }
 0x6ea   : > { %v5088_v3 = vsub.f32 %v2597_v0, %v2632_v58  ;;  %v2659_v13 = vsel %vm753_vm1, %v2647_v49, 0.0 }
 0x6eb   : > { %2660 = vadd.xlane.f32.xlu1 %v2659_v13 }
 0x6ec   : > { %v2648_v32 = vmul.f32 %v5088_v3, %v5088_v3 }
 0x6ee   : > { %v2662_v20 = vsel %vm753_vm1, %v2648_v32, 0.0 }
 0x6ef   : > { %2663 = vadd.xlane.f32.xlu0 %v2662_v20 }
 0x72e   : > { %v2618_v9 = vpop.xlane.xlu1 %2617 }
 0x72f   : > { %v2633_v21 = vmul.f32 0.03125, %v2618_v9 }
 0x730   : > { %v2621_v60 = vpop.xlane.xlu0 %2620 }
 0x731   : > { %v5096_v12 = vsub.f32 %v2598_v26, %v2633_v21  ;;  %v2634_v42 = vmul.f32 0.03125, %v2621_v60 }
 0x732   : > { %v2624_v25 = vpop.xlane.xlu1 %2623 }
 0x733   : > { %v5098_v23 = vsub.f32 %v2599_v40, %v2634_v42  ;;  %v2635_v56 = vmul.f32 0.03125, %v2624_v25  ;;  %v2649_v57 = vmul.f32 %v5096_v12, %v5096_v12  ;;  %v3512_v40 = vld [vmem:[%s5369_s26] ss:$0 sm:$0xff] }
 0x734   : > { %v2627_v22 = vpop.xlane.xlu0 %2626 }
 0x735   : > { %v5102_v10 = vsub.f32 %v2600_v7, %v2635_v56  ;;  %v2636_v8 = vmul.f32 0.03125, %v2627_v22  ;;  %v2665_v28 = vsel %vm753_vm1, %v2649_v57, 0.0  ;;  %v2650_v5 = vmul.f32 %v5098_v23, %v5098_v23 }
 0x736   : > { %2666 = vadd.xlane.f32.xlu1 %v2665_v28 }
 0x737   : > { %v5107_v33 = vsub.f32 %v2601_v1, %v2636_v8  ;;  %v2668_v24 = vsel %vm753_vm1, %v2650_v5, 0.0  ;;  %v2651_v16 = vmul.f32 %v5102_v10, %v5102_v10 }
 0x738   : > { %2669 = vadd.xlane.f32.xlu0 %v2668_v24 }
 0x739   : > { %v2671_v44 = vsel %vm753_vm1, %v2651_v16, 0.0  ;;  %v2652_v50 = vmul.f32 %v5107_v33, %v5107_v33 }
 0x73a   : > { %2672 = vadd.xlane.f32.xlu1 %v2671_v44 }
 0x73b   : > { %v2674_v0 = vsel %vm753_vm1, %v2652_v50, 0.0 }
 0x73c   : > { %2675 = vadd.xlane.f32.xlu0 %v2674_v0 }
 0x774   : > { %v2655_v51 = vpop.xlane.xlu1 %2654 }
 0x775   : > { %v2677_v35 = vmul.f32 0.03125, %v2655_v51  ;;  %v3514_v51 = vld [vmem:[%s680_s3] ss:$0 sm:$0xff] }
 0x776   : > { %v2658_v6 = vpop.xlane.xlu0 %2657 }
 0x777   : > { %v2685_v29 = vadd.f32 1e-05, %v2677_v35  ;;  %v2678_v19 = vmul.f32 0.03125, %v2658_v6 }
 0x778   : > { %v2661_v59 = vpop.xlane.xlu1 %2660 }
 0x779   : > { %4093 = vrsqrt.f32 %v2685_v29  ;;  %v2686_v46 = vadd.f32 1e-05, %v2678_v19  ;;  %v2679_v26 = vmul.f32 0.03125, %v2661_v59 }
 0x77b   : > { %4095 = vrsqrt.f32 %v2686_v46  ;;  %v2687_v63 = vadd.f32 1e-05, %v2679_v26 }
 0x77c   : > { %v2664_v38 = vpop.xlane.xlu0 %2663 }
 0x77d   : > { %4097 = vrsqrt.f32 %v2687_v63  ;;  %v2680_v11 = vmul.f32 0.03125, %v2664_v38 }
 0x77f   : > { %v2688_v7 = vadd.f32 1e-05, %v2680_v11 }
 0x781   : > { %4099 = vrsqrt.f32 %v2688_v7 }
 0x783   : > { %v4094_v18 = vpop.eup %4093 }
 0x784   : > { %v2701_v55 = vmul.f32 %v4094_v18, %v5074_v41 }
 0x785   : > { %v4096_v43 = vpop.eup %4095 }
 0x786   : > { %v2702_v1 = vmul.f32 %v4096_v43, %v5076_v27  ;;  %v2715_v54 = vmul.f32 %v3512_v40, %v2701_v55 }
 0x787   : > { %v4098_v37 = vpop.eup %4097 }
 0x788   : > { %v2703_v34 = vmul.f32 %v4098_v37, %v5080_v47  ;;  %v2716_v17 = vmul.f32 %v3512_v40, %v2702_v1  ;;  %v5131_v2 = vadd.f32 %v3513_v62, %v2715_v54 }
 0x78a   : > { %v5133_v4 = vadd.f32 %v3513_v62, %v2716_v17  ;;  %v2717_v36 = vmul.f32 %v3512_v40, %v2703_v34 }
 0x78b   : > { %v4100_v45 = vpop.eup %4099 }
 0x78c   : > { %v2704_v41 = vmul.f32 %v4100_v45, %v5088_v3  ;;  %v2737_v27 = vpack.c.bf16 %v5133_v4, %v5131_v2  ;;  %v5139_v48 = vadd.f32 %v3513_v62, %v2717_v36 }
 0x78e   : > { %v2718_v31 = vmul.f32 %v3512_v40, %v2704_v41  ;;  %3794 = vmatprep.mubr.msk.bf16.mxu0 %vm753_vm1, %v2737_v27 }
 0x790   : > { %v5141_v15 = vadd.f32 %v3513_v62, %v2718_v31 }
 0x792   : > { %v2738_v47 = vpack.c.bf16 %v5141_v15, %v5139_v48 }
 0x794   : > { %3795 = vmatmul.mubr.msk.bf16.vlgmr.msra.gmra.mrb[40].mxu0 %vm753_vm1, %v2738_v47 }
 0x7c3   : > { %v2667_v61 = vpop.xlane.xlu1 %2666 }
 0x7c4   : > { %v2681_v58 = vmul.f32 0.03125, %v2667_v61 }
 0x7c5   : > { %v2670_v30 = vpop.xlane.xlu0 %2669 }
 0x7c6   : > { %v2689_v49 = vadd.f32 1e-05, %v2681_v58  ;;  %v2682_v3 = vmul.f32 0.03125, %v2670_v30  ;;  %v3521_v58 = vld [vmem:[%s688_s25] ss:$0 sm:$0xff] }
 0x7c7   : > { %v2673_v13 = vpop.xlane.xlu1 %2672 }
 0x7c8   : > { %4101 = vrsqrt.f32 %v2689_v49  ;;  %v2690_v32 = vadd.f32 1e-05, %v2682_v3  ;;  %v2683_v20 = vmul.f32 0.03125, %v2673_v13 }
 0x7c9   : > { %v2676_v53 = vpop.xlane.xlu0 %2675 }
 0x7ca   : > { %4103 = vrsqrt.f32 %v2690_v32  ;;  %v2691_v52 = vadd.f32 1e-05, %v2683_v20  ;;  %v2684_v9 = vmul.f32 0.03125, %v2676_v53 }
 0x7cc   : > { %4105 = vrsqrt.f32 %v2691_v52  ;;  %v2692_v21 = vadd.f32 1e-05, %v2684_v9 }
 0x7ce   : > { %4107 = vrsqrt.f32 %v2692_v21 }
 0x7d2   : > { %v4102_v60 = vpop.eup %4101 }
 0x7d3   : > { %v2705_v42 = vmul.f32 %v4102_v60, %v5096_v12 }
 0x7d4   : > { %v4104_v25 = vpop.eup %4103 }
 0x7d5   : > { %v2706_v56 = vmul.f32 %v4104_v25, %v5098_v23  ;;  %v2719_v57 = vmul.f32 %v3512_v40, %v2705_v42 }
 0x7d6   : > { %v4106_v22 = vpop.eup %4105 }
 0x7d7   : > { %v2707_v8 = vmul.f32 %v4106_v22, %v5102_v10  ;;  %v2720_v28 = vmul.f32 %v3512_v40, %v2706_v56  ;;  %v5150_v16 = vadd.f32 %v3513_v62, %v2719_v57 }
 0x7d8   : > { %v4108_v5 = vpop.eup %4107 }
 0x7d9   : > { %v2708_v24 = vmul.f32 %v4108_v5, %v5107_v33  ;;  %v5152_v44 = vadd.f32 %v3513_v62, %v2720_v28  ;;  %v2721_v50 = vmul.f32 %v3512_v40, %v2707_v8  ;;  %v3963_v33 = vld [vmem:[%s4346_s15 + $0x10] sm:$0xff]  }
 0x7da   : > { %3806 = vmatprep.subr.bf16.mxu1 %v3963_v33 }
 0x7db   : > { %v2739_v12 = vpack.c.bf16 %v5152_v44, %v5150_v16  ;;  %v2722_v23 = vmul.f32 %v3512_v40, %v2708_v24  ;;  %v5157_v0 = vadd.f32 %v3513_v62, %v2721_v50  ;;  %3807 = vmatpush3.bf16.msra.mxu1 %v3963_v33 }
 0x7dc   : > { %3808 = vmatprep.subr.bf16.mxu1 %v3964_v39 }
 0x7dd   : > { %3798 = vmatprep.mubr.msk.bf16.mxu0 %vm753_vm1, %v2739_v12  ;;  %v5159_v10 = vadd.f32 %v3513_v62, %v2722_v23 }
 0x7df   : > { %v2740_v14 = vpack.c.bf16 %v5159_v10, %v5157_v0  ;;  %3809 = vmatpush3.bf16.msra.mxu1 %v3964_v39 }
 0x7e1   : > { %3799 = vmatmul.mubr.msk.bf16.gmra.mrb[44].mxu0 %vm753_vm1, %v2740_v14 }
 0x867   : > { %v3796_v35 = vpop.f32.mrb[40].mxu0 }
 0x868   : > { %v2819_v6 = vadd.f32 %v3796_v35, %v3514_v51  ;;  %v2810_v29 = vpop.f32.mrb[41].mxu0 }
 0x869   : > { %v2811_v19 = vadd.f32 %v3514_v51, %v2810_v29  ;;  %v3797_v59 = vpop.f32.mrb[42].mxu0 }
 0x86a   : > { %v2822_v46 = vadd.f32 %v3797_v59, %v3514_v51  ;;  %v2813_v26 = vpop.f32.mrb[43].mxu0  ;;  %v2843_v38 = vmax.f32 %v2819_v6, 0.0 }
 0x86b   : > { %v2814_v63 = vadd.f32 %v3514_v51, %v2813_v26  ;;  %v2841_v7 = vmax.f32 %v2811_v19, 0.0 }
 0x86c   : > { %v2844_v11 = vmax.f32 %v2822_v46, 0.0 }
 0x86d   : > { %v2842_v18 = vmax.f32 %v2814_v63, 0.0 }
 0x86e   : > { %v2850_v40 = vpack.c.bf16 %v2844_v11, %v2843_v38 }
 0x86f   : > { %v2849_v55 = vpack.c.bf16 %v2842_v18, %v2841_v7 }
 0x871   : > { %3810 = vmatprep.mubr.msk.bf16.mxu1 %vm2892_vm5, %v2849_v55 }
 0x872   : > { %3811 = vmatmul.mubr.msk.bf16.vlgmr.msra.gmra.mrb[40].mxu1 %vm2892_vm5, %v2850_v40 }
 0x8b4   : > { %v3800_v43 = vpop.f32.mrb[44].mxu0 }
 0x8b5   : > { %v2835_v1 = vadd.f32 %v3800_v43, %v3514_v51  ;;  %v2826_v54 = vpop.f32.mrb[45].mxu0 }
 0x8b6   : > { %v2827_v37 = vadd.f32 %v3514_v51, %v2826_v54  ;;  %v3801_v62 = vpop.f32.mrb[46].mxu0 }
 0x8b7   : > { %v2838_v34 = vadd.f32 %v3801_v62, %v3514_v51  ;;  %v2829_v17 = vpop.f32.mrb[47].mxu0  ;;  %v2847_v36 = vmax.f32 %v2835_v1, 0.0 }
 0x8b8   : > { %v2830_v45 = vadd.f32 %v3514_v51, %v2829_v17  ;;  %v2845_v27 = vmax.f32 %v2827_v37, 0.0 }
 0x8b9   : > { %v2848_v41 = vmax.f32 %v2838_v34, 0.0 }
 0x8ba   : > { %v2846_v31 = vmax.f32 %v2830_v45, 0.0 }
 0x8bb   : > { %v2852_v47 = vpack.c.bf16 %v2848_v41, %v2847_v36 }
 0x8bc   : > { %v2851_v61 = vpack.c.bf16 %v2846_v31, %v2845_v27 }
 0x8be   : > { %3814 = vmatprep.mubr.msk.bf16.mxu1 %vm2892_vm5, %v2851_v61 }
 0x8bf   : > { %3815 = vmatmul.mubr.msk.bf16.gmra.mrb[44].mxu1 %vm2892_vm5, %v2852_v47 }
 0x945   : > { %v3812_v30 = vpop.f32.mrb[40].mxu1 }
 0x946   : > { %v2948_v49 = vadd.f32 %v3812_v30, %v3521_v58  ;;  %v2939_v3 = vpop.f32.mrb[41].mxu1 }
 0x947   : > { %v2940_v13 = vadd.f32 %v3521_v58, %v2939_v3  ;;  %v3813_v32 = vpop.f32.mrb[42].mxu1 }
 0x948   : > { %v2972_v20 = vadd.f32 %v2948_v49, %v5139_v48  ;;  %v2951_v53 = vadd.f32 %v3813_v32, %v3521_v58  ;;  %v2942_v52 = vpop.f32.mrb[43].mxu1 }
 0x949   : > { %v2943_v9 = vadd.f32 %v3521_v58, %v2942_v52  ;;  %v2970_v21 = vadd.f32 %v2940_v13, %v5131_v2 }
 0x94a   : > { %v2973_v60 = vadd.f32 %v2951_v53, %v5141_v15  ;;  %v2986_v42 = vsel %vm753_vm1, %v2972_v20, 0.0 }
 0x94b   : > { %2987 = vadd.xlane.f32.xlu1 %v2986_v42  ;;  %v2971_v25 = vadd.f32 %v2943_v9, %v5133_v4  ;;  %v2980_v57 = vsel %vm753_vm1, %v2970_v21, 0.0 }
 0x94c   : > { %v2989_v56 = vsel %vm753_vm1, %v2973_v60, 0.0 }
 0x94d   : > { %2990 = vadd.xlane.f32.xlu0 %v2989_v56  ;;  %v2983_v48 = vsel %vm753_vm1, %v2971_v25, 0.0 }
 0x94f   : > { %2981 = vadd.xlane.f32.xlu1 %v2980_v57 }
 0x951   : > { %2984 = vadd.xlane.f32.xlu0 %v2983_v48 }
 0x992   : > { %v3816_v22 = vpop.f32.mrb[44].mxu1 }
 0x993   : > { %v2955_v8 = vpop.f32.mrb[45].mxu1  ;;  %v2964_v28 = vadd.f32 %v3816_v22, %v3521_v58 }
 0x994   : > { %v2956_v2 = vadd.f32 %v3521_v58, %v2955_v8  ;;  %v3817_v5 = vpop.f32.mrb[46].mxu1 }
 0x995   : > { %v2958_v15 = vpop.f32.mrb[47].mxu1  ;;  %v2967_v50 = vadd.f32 %v3817_v5, %v3521_v58  ;;  %v2976_v4 = vadd.f32 %v2964_v28, %v5157_v0 }
 0x996   : > { %v2974_v24 = vadd.f32 %v2956_v2, %v5150_v16  ;;  %v2959_v12 = vadd.f32 %v3521_v58, %v2958_v15  ;;  %v3530_v15 = vld [vmem:[%s691_s28] ss:$0 sm:$0xff]  ;;  %s5371_s28 = sld [smem:[#allocation12_spill]] (!%p3532_p6) }
 0x997   : > { %v2977_v33 = vadd.f32 %v2967_v50, %v5159_v10  ;;  %v2998_v51 = vsel %vm753_vm1, %v2976_v4, 0.0 }
 0x998   : > { %v2975_v23 = vadd.f32 %v2959_v12, %v5152_v44  ;;  %v2992_v14 = vsel %vm753_vm1, %v2974_v24, 0.0  ;;  %v3531_v12 = vld [vmem:[%s694_s13] ss:$0 sm:$0xff] }
 0x999   : > { %2993 = vadd.xlane.f32.xlu1 %v2992_v14  ;;  %v3001_v35 = vsel %vm753_vm1, %v2977_v33, 0.0 }
 0x99a   : > { %v2995_v39 = vsel %vm753_vm1, %v2975_v23, 0.0 }
 0x99b   : > { %2996 = vadd.xlane.f32.xlu0 %v2995_v39 }
 0x99d   : > { %2999 = vadd.xlane.f32.xlu1 %v2998_v51 }
 0x99f   : > { %3002 = vadd.xlane.f32.xlu0 %v3001_v35 }
 0x9d8   : > { %v2988_v16 = vpop.xlane.xlu1 %2987 }
 0x9d9   : > { %v3006_v6 = vmul.f32 0.03125, %v2988_v16 }
 0x9da   : > { %v2991_v29 = vpop.xlane.xlu0 %2990 }
 0x9db   : > { %v5196_v0 = vsub.f32 %v2972_v20, %v3006_v6  ;;  %v3007_v44 = vmul.f32 0.03125, %v2991_v29 }
 0x9dc   : > { %v2982_v19 = vpop.xlane.xlu1 %2981 }
 0x9dd   : > { %v5198_v59 = vsub.f32 %v2973_v60, %v3007_v44  ;;  %v3004_v46 = vmul.f32 0.03125, %v2982_v19  ;;  %v3022_v10 = vmul.f32 %v5196_v0, %v5196_v0 }
 0x9de   : > { %v2985_v26 = vpop.xlane.xlu0 %2984 }
 0x9df   : > { %v5202_v63 = vsub.f32 %v2970_v21, %v3004_v46  ;;  %v3005_v38 = vmul.f32 0.03125, %v2985_v26  ;;  %v3034_v11 = vsel %vm753_vm1, %v3022_v10, 0.0  ;;  %v3023_v7 = vmul.f32 %v5198_v59, %v5198_v59 }
 0x9e0   : > { %3035 = vadd.xlane.f32.xlu1 %v3034_v11 }
 0x9e1   : > { %v5207_v18 = vsub.f32 %v2971_v25, %v3005_v38  ;;  %v3037_v40 = vsel %vm753_vm1, %v3023_v7, 0.0  ;;  %v3020_v55 = vmul.f32 %v5202_v63, %v5202_v63 }
 0x9e2   : > { %3038 = vadd.xlane.f32.xlu0 %v3037_v40 }
 0x9e3   : > { %v3028_v43 = vsel %vm753_vm1, %v3020_v55, 0.0  ;;  %v3021_v1 = vmul.f32 %v5207_v18, %v5207_v18 }
 0x9e4   : > { %3029 = vadd.xlane.f32.xlu1 %v3028_v43 }
 0x9e5   : > { %v3031_v54 = vsel %vm753_vm1, %v3021_v1, 0.0 }
 0x9e6   : > { %3032 = vadd.xlane.f32.xlu0 %v3031_v54 }
 0xa26   : > { %v2994_v37 = vpop.xlane.xlu1 %2993 }
 0xa27   : > { %v3008_v62 = vmul.f32 0.03125, %v2994_v37 }
 0xa28   : > { %v2997_v34 = vpop.xlane.xlu0 %2996 }
 0xa29   : > { %v5216_v17 = vsub.f32 %v2974_v24, %v3008_v62  ;;  %v3009_v45 = vmul.f32 0.03125, %v2997_v34 }
 0xa2a   : > { %v3000_v36 = vpop.xlane.xlu1 %2999 }
 0xa2b   : > { %v5218_v41 = vsub.f32 %v2975_v23, %v3009_v45  ;;  %v3010_v27 = vmul.f32 0.03125, %v3000_v36  ;;  %v3024_v31 = vmul.f32 %v5216_v17, %v5216_v17 }
 0xa2c   : > { %v3003_v47 = vpop.xlane.xlu0 %3002 }
 0xa2d   : > { %v5222_v61 = vsub.f32 %v2976_v4, %v3010_v27  ;;  %v3011_v58 = vmul.f32 0.03125, %v3003_v47  ;;  %v3040_v30 = vsel %vm753_vm1, %v3024_v31, 0.0  ;;  %v3025_v49 = vmul.f32 %v5218_v41, %v5218_v41 }
 0xa2e   : > { %3041 = vadd.xlane.f32.xlu1 %v3040_v30 }
 0xa2f   : > { %v5227_v3 = vsub.f32 %v2977_v33, %v3011_v58  ;;  %v3043_v13 = vsel %vm753_vm1, %v3025_v49, 0.0  ;;  %v3026_v32 = vmul.f32 %v5222_v61, %v5222_v61 }
 0xa30   : > { %3044 = vadd.xlane.f32.xlu0 %v3043_v13 }
 0xa31   : > { %v3046_v20 = vsel %vm753_vm1, %v3026_v32, 0.0  ;;  %v3027_v53 = vmul.f32 %v5227_v3, %v5227_v3 }
 0xa32   : > { %3047 = vadd.xlane.f32.xlu1 %v3046_v20  ;;  %v4195_v20 = vmov (!%p3532_p6), 0.0|0.0  }
 0xa33   : > { %v3049_v52 = vsel %vm753_vm1, %v3027_v53, 0.0  ;;  %3829 = vmatprep.subr.bf16.mxu0 (!%p3532_p6), %v4195_v20 }
 0xa34   : > { %3050 = vadd.xlane.f32.xlu0 %v3049_v52  ;;  %v3155_v52 = vld [vmem:[%s5371_s28 + $0x18] sm:$0xff] (!%p3532_p6) }
 0xa6d   : > { %v3036_v9 = vpop.xlane.xlu1 %3035 }
 0xa6e   : > { %v3054_v21 = vmul.f32 0.03125, %v3036_v9  ;;  %v4197_v9 = vmov (!%p3532_p6), 0.0  }
 0xa6f   : > { %v3039_v60 = vpop.xlane.xlu0 %3038  ;;  %3826 = vmatprep.mubr.msk.f32.mxu0 (!%p3532_p6), %vm4196_vm6, %v4197_v9 }
 0xa70   : > { %v3062_v42 = vadd.f32 1e-05, %v3054_v21  ;;  %v3055_v25 = vmul.f32 0.03125, %v3039_v60 }
 0xa71   : > { %v3030_v56 = vpop.xlane.xlu1 %3029 }
 0xa72   : > { %4109 = vrsqrt.f32 %v3062_v42  ;;  %v3063_v57 = vadd.f32 1e-05, %v3055_v25  ;;  %v3052_v48 = vmul.f32 0.03125, %v3030_v56 }
 0xa73   : > { %v3033_v22 = vpop.xlane.xlu0 %3032 }
 0xa74   : > { %4111 = vrsqrt.f32 %v3063_v57  ;;  %v3060_v8 = vadd.f32 1e-05, %v3052_v48  ;;  %v3053_v28 = vmul.f32 0.03125, %v3033_v22 }
 0xa76   : > { %4113 = vrsqrt.f32 %v3060_v8  ;;  %v3061_v2 = vadd.f32 1e-05, %v3053_v28 }
 0xa78   : > { %4115 = vrsqrt.f32 %v3061_v2 }
 0xa7c   : > { %v4110_v5 = vpop.eup %4109 }
 0xa7d   : > { %v3078_v24 = vmul.f32 %v4110_v5, %v5196_v0 }
 0xa7e   : > { %v4112_v50 = vpop.eup %4111 }
 0xa7f   : > { %v3092_v4 = vmul.f32 %v3530_v15, %v3078_v24  ;;  %v3079_v23 = vmul.f32 %v4112_v50, %v5198_v59 }
 0xa80   : > { %v4114_v14 = vpop.eup %4113 }
 0xa81   : > { %v5248_v33 = vadd.f32 %v3531_v12, %v3092_v4  ;;  %v3093_v39 = vmul.f32 %v3530_v15, %v3079_v23  ;;  %v3076_v51 = vmul.f32 %v4114_v14, %v5202_v63 }
 0xa82   : > { %v4116_v35 = vpop.eup %4115 }
 0xa83   : > { %3114 = vst.msk [vmem:[#allocation2 + $0x10] sm:$0xff] %vm753_vm1, %v5248_v33  ;;  %v5253_v16 = vadd.f32 %v3531_v12, %v3093_v39  ;;  %v3090_v6 = vmul.f32 %v3530_v15, %v3076_v51  ;;  %v3077_v29 = vmul.f32 %v4116_v35, %v5207_v18  ;;  %v3127_v42 = vsel (!%p3532_p6), %vm753_vm1, %v5248_v33, 0.0 }
 0xa85   : > { %3115 = vst.msk [vmem:[#allocation2 + $0x18] sm:$0xff] %vm753_vm1, %v5253_v16  ;;  %v3104_v0 = vadd.f32 %v3531_v12, %v3090_v6  ;;  %v3091_v44 = vmul.f32 %v3530_v15, %v3077_v29  ;;  %v3129_v48 = vsel (!%p3532_p6), %vm753_vm1, %v5253_v16, 0.0 }
 0xa87   : > { %3112 = vst.msk [vmem:[#allocation2] sm:$0xff] %vm753_vm1, %v3104_v0  ;;  %v3105_v19 = vadd.f32 %v3531_v12, %v3091_v44  ;;  %v3124_v21 = vsel (!%p3532_p6), %vm753_vm1, %v3104_v0, 0.0 }
 0xa89   : > { %3113 = vst.msk [vmem:[#allocation2 + $0x8] sm:$0xff] %vm753_vm1, %v3105_v19  ;;  %v3125_v60 = vsel (!%p3532_p6), %vm753_vm1, %v3105_v19, 0.0 }
 0xa8a   : > { %v3126_v25 = vadd.f32 (!%p3532_p6), %v3125_v60, %v3124_v21 }
 0xa8c   : > { %v3128_v28 = vadd.f32 (!%p3532_p6), %v3127_v42, %v3126_v25 }
 0xabb   : > { %v3042_v59 = vpop.xlane.xlu1 %3041 }
 0xabc   : > { %v3056_v46 = vmul.f32 0.03125, %v3042_v59 }
 0xabd   : > { %v3045_v10 = vpop.xlane.xlu0 %3044 }
 0xabe   : > { %v3064_v26 = vadd.f32 1e-05, %v3056_v46  ;;  %v3057_v63 = vmul.f32 0.03125, %v3045_v10  ;;  %v4198_v46 = vmov (!%p3532_p6), 1966171168  }
 0xabf   : > { %v3048_v38 = vpop.xlane.xlu1 %3047  ;;  %v3241_v10 = vunpack.c.l.s4 (!%p3532_p6), %v4198_v46 }
 0xac0   : > { %4117 = vrsqrt.f32 %v3064_v26  ;;  %v3065_v11 = vadd.f32 1e-05, %v3057_v63  ;;  %v3058_v7 = vmul.f32 0.03125, %v3048_v38  ;;  %v3243_v26 = vlaneseq (!%p3532_p6) }
 0xac1   : > { %v3051_v18 = vpop.xlane.xlu0 %3050  ;;  %v3242_v63 = vunpack.c.0.s8 (!%p3532_p6), %v3241_v10 }
 0xac2   : > { %4119 = vrsqrt.f32 %v3065_v11  ;;  %v3066_v40 = vadd.f32 1e-05, %v3058_v7  ;;  %v3059_v55 = vmul.f32 0.03125, %v3051_v18  ;;  %v3244_v38 = vshrl.u32 (!%p3532_p6), %v3243_v26, 7  ;;  %v3533_v11 = vld [vmem:[%s5372_s17] ss:$0 sm:$0xff] (!%p3532_p6) }
 0xac4   : > { %4121 = vrsqrt.f32 %v3066_v40  ;;  %v3067_v43 = vadd.f32 1e-05, %v3059_v55  ;;  %v3245_v7 = vsub.s32 (!%p3532_p6), %v3242_v63, %v3244_v38 }
 0xac6   : > { %4123 = vrsqrt.f32 %v3067_v43 }
 0xaca   : > { %v4118_v1 = vpop.eup %4117 }
 0xacb   : > { %v3080_v54 = vmul.f32 %v4118_v1, %v5216_v17 }
 0xacc   : > { %v4120_v37 = vpop.eup %4119 }
 0xacd   : > { %v3094_v62 = vmul.f32 %v3530_v15, %v3080_v54  ;;  %v3081_v34 = vmul.f32 %v4120_v37, %v5218_v41  ;;  %v3152_v41 = vld [vmem:[%s5371_s28] sm:$0xff] (!%p3532_p6) }
 0xace   : > { %v4122_v45 = vpop.eup %4121 }
 0xacf   : > { %v3108_v36 = vadd.f32 %v3531_v12, %v3094_v62  ;;  %v3095_v27 = vmul.f32 %v3530_v15, %v3081_v34  ;;  %v3082_v31 = vmul.f32 %v4122_v45, %v5222_v61  ;;  %v3153_v61 = vld [vmem:[%s5371_s28 + $0x8] sm:$0xff] (!%p3532_p6) }
 0xad0   : > { %v4124_v47 = vpop.eup %4123  ;;  %v3830_v53 = vpack.c.bf16 (!%p3532_p6), %v3153_v61, %v3152_v41 }
 0xad1   : > { %3116 = vst.msk [vmem:[#allocation2 + $0x20] sm:$0xff] %vm753_vm1, %v3108_v36  ;;  %v3109_v58 = vadd.f32 %v3531_v12, %v3095_v27  ;;  %v3096_v30 = vmul.f32 %v3530_v15, %v3082_v31  ;;  %v3083_v49 = vmul.f32 %v4124_v47, %v5227_v3  ;;  %3123 = sbr.rel (%p3532_p6) target bundleno = 3014 (0xbc6), region = 88  ;;  %v3154_v3 = vld [vmem:[%s5371_s28 + $0x10] sm:$0xff] (!%p3532_p6)  ;;  %v3137_v56 = vsel (!%p3532_p6), %vm753_vm1, %v3108_v36, 0.0 }
 0xad2   : > { %3831 = vmatpush3.bf16.msra.mxu0 (!%p3532_p6), %v3830_v53  ;;  %v3833_v57 = vpack.c.bf16 (!%p3532_p6), %v3155_v52, %v3154_v3 }
 0xad3   : > { %3117 = vst.msk [vmem:[#allocation2 + $0x28] sm:$0xff] %vm753_vm1, %v3109_v58  ;;  %v3110_v13 = vadd.f32 %v3531_v12, %v3096_v30  ;;  %v3097_v17 = vmul.f32 %v3530_v15, %v3083_v49  ;;  %v3138_v22 = vsel (!%p3532_p6), %vm753_vm1, %v3109_v58, 0.0  ;;  %3832 = vmatprep.subr.bf16.mxu0 (!%p3532_p6), %v4195_v20  ;;  %v3130_v15 = vadd.f32 (!%p3532_p6), %v3129_v48, %v3128_v28 }
 0xad4   : > { %v3139_v2 = vadd.f32 (!%p3532_p6), %v3138_v22, %v3137_v56 }
 0xad5   : > { %3118 = vst.msk [vmem:[#allocation2 + $0x30] sm:$0xff] %vm753_vm1, %v3110_v13  ;;  %v3111_v32 = vadd.f32 %v3531_v12, %v3097_v17  ;;  %v3140_v8 = vsel (!%p3532_p6), %vm753_vm1, %v3110_v13, 0.0  ;;  %v3131_v50 = vrot.slane (!%p3532_p6), %v3130_v15, 4 }
 0xad6   : > { %v3141_v24 = vadd.f32 (!%p3532_p6), %v3140_v8, %v3139_v2  ;;  %3834 = vmatpush3.bf16.msra.mxu0 (!%p3532_p6), %v3833_v57 }
 0xad7   : > { %3119 = vst.msk [vmem:[#allocation2 + $0x38] sm:$0xff] %vm753_vm1, %v3111_v32  ;;  %v3142_v5 = vsel (!%p3532_p6), %vm753_vm1, %v3111_v32, 0.0  ;;  %v3132_v4 = vadd.f32 (!%p3532_p6), %v3131_v50, %v3130_v15 }
 0xad8   : > { %v3143_v12 = vadd.f32 %v3142_v5, %v3141_v24 }
 0xad9   : > { %v3133_v14 = vrot.slane %v3132_v4, 2 }
 0xada   : > { %v3144_v23 = vrot.slane %v3143_v12, 4 }
 0xadb   : > { %v3134_v39 = vadd.f32 %v3133_v14, %v3132_v4 }
 0xadc   : > { %v3145_v33 = vadd.f32 %v3144_v23, %v3143_v12 }
 0xadd   : > { %v3135_v35 = vrot.slane %v3134_v39, 1 }
 0xade   : > { %v3146_v51 = vrot.slane %v3145_v33, 2 }
 0xadf   : > { %v3136_v6 = vadd.f32 %v3135_v35, %v3134_v39 }
 0xae0   : > { %v3147_v16 = vadd.f32 %v3146_v51, %v3145_v33 }
 0xae1   : > { %v3150_v44 = vmul.f32 0.03125, %v3136_v6 }
 0xae2   : > { %v3148_v29 = vrot.slane %v3147_v16, 1 }
 0xae4   : > { %v3149_v0 = vadd.f32 %v3148_v29, %v3147_v16 }
 0xae6   : > { %v3151_v19 = vmul.f32 0.03125, %v3149_v0 }
 0xae8   : > { %v3166_v59 = vsel %vm3165_vm7, %v3151_v19, %v3150_v44 }
 0xae9   : > { %3827 = vmatmul.mubr.msk.f32.vlgmr.msra.gmra.mrb[0].mxu0 %vm753_vm1, %v3166_v59 }
 0xbbc   : > { %v3235_v18 = vpop.f32.mrb[0].mxu0 }
 0xbbd   : > { %v3236_v40 = vadd.f32 %v3533_v11, %v3235_v18  ;;  %v3828_v55 = vpop.f32.mrb[1].mxu0 }
 0xbbf   : > { %v3246_v43 = vrot.slane %v3236_v40, %v3245_v7 }
 0xbc1   : > { %v3247_v1 = vcombine.high %v3246_v43, %v3246_v43  ;;  %v3254_v54 = vrot.slane %v3246_v43, %v3245_v7 }
 0xbc3   : > { %v3261_v37 = vrot.slane %v3247_v1, %v3245_v7  ;;  %3265 = vst.msk [vmem:[#allocation3] sm:$0x1] %vm3264_vm8, %v3254_v54 }
 0xbc5   : > { %3266 = vst.msk [vmem:[#allocation3 + $0x1] sm:$0x1] %vm3264_vm8, %v3261_v37 }
 0xbc6 PF: > { %s5373_s21 = sld [smem:[#allocation7_spill]]  ;;  %s4199_s25 = smov [#allocation3]  }
 0xbc7   : > { %s3276_s22 = sshll.u32 %s4199_s25, 4  ;;  %s3277_s22 = int_to_ptr.vmem [resolvable:$true] %s3276_s22 }
 0xbc8   : > { %s4133_s30 = scalar_lea.vmem %s3277_s22, 32  ;;  %p4140_p11 = scmp.lt.s32.totalorder %s3277_s22, %s3277_s22 }
 0xbc9   : > { %p4134_p8 = scmp.ne.s32.totalorder %s3277_s22, %s4133_s30  ;;  %p4141_p12 = scmp.lt.s32.totalorder %s4133_s30, %s4133_s30 }
 0xbcb   : > { %p4142_p13 = por %p4141_p12, %p4140_p11 }
 0xbcc   : > { %s5374_s3 = sadd.s32 4294967295, %s5373_s21  }
 0xbcd   : > { %p5297_p7 = scmp.eq.s32.totalorder %s5374_s3, 1 }
 0xbcf   : > { %p4135_p9 = pnand %p4134_p8, %p5297_p7 }
 0xbd1   : > { %p4136_p10 = pneg %p4135_p9 }
 0xbd3   : > { %p4143_p0 = pnand %p4142_p13, %p4136_p10 }
 0xbd5   : > { %4146 = shalt.err (!%p4143_p0)
}
 0xbd6   : > { %s5376_s23 = sld [smem:[#allocation14_spill]] }
 0xbdc   : > { %s4147_s27 = scalar_lea.hbm %s5376_s23, 32 }
 0xbdd   : > { %p4148_p1 = scmp.ne.s32.totalorder %s5376_s23, %s4147_s27  ;;  %p4153_p4 = scmp.lt.u32.totalorder %s4147_s27, %s5376_s23 }
 0xbdf   : > { %p4149_p2 = pnand %p4148_p1, %p5297_p7 }
 0xbe1   : > { %p4150_p3 = pneg %p4149_p2 }
 0xbe3   : > { %p4155_p5 = pnand %p4153_p4, %p4150_p3 }
 0xbe5   : > { %4158 = shalt.err (!%p4155_p5)
}
 0xbe6   : > { %s4200_s29 = smov 1  }
 0xbe7   : > { %3852 = dma.vmem_to_hbm [thread:$0]  (%p5297_p7), %s3277_s22, 32, %s5376_s23, [#allocation4], %s4193_s19, %s4193_s19, %s4200_s29  }
 0xbe8   : > { %4172 = dma.done.wait (%p5297_p7), [#allocation4], 32  }
 0xbe9   : > { %4174 = vsyncadd (%p5297_p7), [#allocation4], 4294967264 }
 0xbea PF: > { %s5377_s17 = sld [smem:[#allocation7_spill]]  ;;  %s5378_s18 = sld [smem:[#allocation6_spill]] }
 0xbeb   : > { %s5379_s19 = sld [smem:[#allocation8_spill]] }
 0xbf0   : > { %s26_s20 = sadd.s32 1, %s5377_s17  }
 0xbf1   : > { %p23_p6 = scmp.ge.s32.totalorder %s26_s20, 4  }
 0xbf3   :  { %25 = sbr.rel (!%p23_p6) target bundleno = 8 (0x8), region = 152 }
 0xbfa   :  { %3292 = vsyncpa [#allocation4], 1 }
 0xbfb   :  { %3294 = vsyncpa [#allocation4 + $0x1], 1 }

</bundles_post_ra>
